<compile_context>
chip_gen: v7x
topology: tpu7x:2x2x1
jax: 0.10.0
libtpu: 0.0.40
codegen_flags: <defaults>
</compile_context>

<pallas_src>
import functools

import jax
import jax.numpy as jnp
from jax.experimental import pallas as pl
from jax.experimental.pallas import tpu as pltpu

LANE = 128        # TPU lane width: last dim of every block is a multiple of this
SUBLANE_B = 16    # batch-tile granularity (covers bf16 (16,128) packing and f32 (8,128))


def _round_up(x, m):
    return ((x + m - 1) // m) * m


def _default_b_tile():
    """Per-generation batch tile: 128 saturates v5e's 4x128^2 MXU; 256 feeds
    v6e/v7x's 2x256^2 MXU and amortizes the ~0.35us/grid-step overhead."""
    try:
        kind = jax.devices()[0].device_kind.lower()
    except Exception:
        kind = ""
    return 128 if "v5" in kind else 256


def _pick_v_tile(vocab_padded, target):
    """Largest multiple of 128 <= target that divides the padded vocab."""
    vt = max(LANE, min(vocab_padded, _round_up(target, LANE)))
    while vocab_padded % vt != 0:
        vt -= LANE
    return vt


def _head_kernel(counts_ref, emb_ref, w1_ref, b1_ref, w2_ref, b2_ref, o_ref,
                 pooled_ref, *, apply_sigmoid):
    """One (batch-tile, vocab-tile) grid step.

    k-axis (vocab) is the reduction: accumulate counts@E into an f32 scratch,
    run the classification head only on the last k step.
    """
    k = pl.program_id(1)

    @pl.when(k == 0)
    def _init():
        pooled_ref[...] = jnp.zeros_like(pooled_ref)

    # Partial mean-pool: bf16 MXU operands, f32 accumulate in VMEM scratch.
    pooled_ref[...] += jnp.dot(counts_ref[...], emb_ref[...],
                               preferred_element_type=jnp.float32)

    @pl.when(k == pl.num_programs(1) - 1)
    def _tail():
        # ff[0]: Linear(input_dim, ff_dim). 1/seq_len is already folded into W1,
        # so no extra (b_tile, Dp) f32 scale pass here.
        h = jnp.dot(pooled_ref[...].astype(w1_ref.dtype), w1_ref[...],
                    preferred_element_type=jnp.float32) + b1_ref[...]
        # ff[1]: Dropout(p) -> inference-mode identity.
        # TODO(synk): training-mode dropout would use pltpu.prng_seed/prng_random_bits.
        # ff[2]: ReLU in f32, then cast to bf16 immediately so at most one
        # (b_tile, FFp) f32 slab is ever live (vreg pressure / spills).
        h = jnp.maximum(h, 0.0).astype(w2_ref.dtype)
        # ff[3]: Linear(ff_dim, num_classes) -> dense 128-lane padded slab.
        logits = jnp.dot(h, w2_ref[...],
                         preferred_element_type=jnp.float32) + b2_ref[...]
        if apply_sigmoid:
            logits = jax.nn.sigmoid(logits)
        o_ref[...] = logits.astype(o_ref.dtype)


def classification_head(counts, emb, w1, b1, w2, b2, *, num_classes, b_tile,
                        v_tile):
    """counts: (Bp, Vp) token counts (bf16); padded bf16 weights, f32 biases.

    Returns (Bp, Cp) f32 -- caller slices to (B, num_classes).
    """
    Bp, Vp = counts.shape
    Dp, FFp = w1.shape
    Cp = w2.shape[1]
    assert Bp % b_tile == 0 and Vp % v_tile == 0

    kernel = functools.partial(_head_kernel, apply_sigmoid=(num_classes == 2))
    grid = (Bp // b_tile, Vp // v_tile)

    cost = pl.CostEstimate(
        flops=2 * Bp * (Vp * Dp + Dp * FFp + FFp * Cp),
        transcendentals=(Bp * Cp) if num_classes == 2 else 0,
        bytes_accessed=(counts.size * counts.dtype.itemsize
                        + emb.size * emb.dtype.itemsize
                        + w1.size * w1.dtype.itemsize + b1.size * 4
                        + w2.size * w2.dtype.itemsize + b2.size * 4
                        + Bp * Cp * 4))

    # Explicit scoped-VMEM budget: double-buffered streams + (conservatively
    # double-counted) resident weights + f32 accumulator + output + slack.
    vmem_bytes = (2 * b_tile * v_tile * counts.dtype.itemsize       # counts stream
                  + 2 * v_tile * Dp * emb.dtype.itemsize            # emb stream
                  + 2 * (Dp * FFp * w1.dtype.itemsize + FFp * 4
                         + FFp * Cp * w2.dtype.itemsize + Cp * 4)   # weights/biases
                  + 2 * b_tile * Cp * 4                             # output tile
                  + b_tile * Dp * 4)                                # pooled scratch
    vmem_limit = min(vmem_bytes + (4 << 20), 64 << 20)

    def build(single_buffer_weights):
        resident_kw = ({"pipeline_mode": pl.Buffered(1)}
                       if single_buffer_weights else {})
        in_specs = [
            # Streams (double-buffered by Pallas across the grid):
            pl.BlockSpec((b_tile, v_tile), lambda i, k: (i, k)),
            pl.BlockSpec((v_tile, Dp), lambda i, k: (k, 0)),
            # Constant-index weights/biases: VMEM-resident, single buffer.
            pl.BlockSpec((Dp, FFp), lambda i, k: (0, 0), **resident_kw),
            pl.BlockSpec((1, FFp), lambda i, k: (0, 0), **resident_kw),
            pl.BlockSpec((FFp, Cp), lambda i, k: (0, 0), **resident_kw),
            pl.BlockSpec((1, Cp), lambda i, k: (0, 0), **resident_kw),
        ]
        return pl.pallas_call(
            kernel,
            out_shape=jax.ShapeDtypeStruct((Bp, Cp), jnp.float32),
            grid_spec=pltpu.PrefetchScalarGridSpec(
                num_scalar_prefetch=0,
                grid=grid,
                in_specs=in_specs,
                out_specs=pl.BlockSpec((b_tile, Cp), lambda i, k: (i, 0)),
                scratch_shapes=[pltpu.VMEM((b_tile, Dp), jnp.float32)]),
            compiler_params=pltpu.CompilerParams(
                # Batch tiles independent -> both TCs on v7x; vocab is the reduction.
                dimension_semantics=("parallel", "arbitrary"),
                vmem_limit_bytes=vmem_limit),
            cost_estimate=cost,
        )

    try:
        return build(True)(counts, emb, w1, b1, w2, b2)
    except Exception:
        # Fallback if this JAX build rejects Buffered(1) on the implicit
        # pallas_call pipeline; only costs the extra constant-weight buffer.
        return build(False)(counts, emb, w1, b1, w2, b2)


def _token_counts(input_ids, batch_padded, vocab_padded, dtype):
    """(B, S) int ids -> (Bp, Vp) token counts, built directly at padded shape
    (pad rows stay all-zero; no extra jnp.pad copy)."""
    B, _ = input_ids.shape
    counts = jnp.zeros((batch_padded, vocab_padded), jnp.float32)
    counts = counts.at[jnp.arange(B)[:, None], input_ids].add(1.0)
    # Counts <= S are exact in bf16 for S <= 256 (<= 2^-9 relative beyond).
    return counts.astype(dtype)


def model_with_classification_head(input_ids, padded_params, *, num_classes,
                                   b_tile=None, v_tile=512):
    """Full forward: synthetic backbone tail recast as counts @ E, then the head."""
    # TODO(synk): for very large vocabularies, replace the dense counts stream
    # with scalar-prefetched input_ids (SMEM) + an in-kernel DMA gather of the
    # S embedding rows per example, keeping HBM traffic at the true B*S rows.
    B, _ = input_ids.shape
    emb = padded_params["emb"]
    Vp, _ = emb.shape

    if b_tile is None:
        b_tile = _default_b_tile()
    # Keep >= 2 batch tiles whenever B allows it so the "parallel" axis gives
    # both v7x TensorCores work (on v5e/v6e this merely bounds the tile).
    bt = max(SUBLANE_B, min(b_tile, _round_up(max(B // 2, 1), SUBLANE_B)))
    Bp = _round_up(B, bt)
    vt = _pick_v_tile(Vp, v_tile)

    counts = _token_counts(input_ids, Bp, Vp, jnp.bfloat16)

    out = classification_head(
        counts, emb, padded_params["w1"], padded_params["b1"],
        padded_params["w2"], padded_params["b2"],
        num_classes=num_classes, b_tile=bt, v_tile=vt)
    return out[:B, :num_classes]


def _init_params(key, vocab, d_in, ff_dim, num_classes):
    k_emb, k_w1, k_b1, k_w2, k_b2 = jax.random.split(key, 5)
    lim1 = 1.0 / jnp.sqrt(d_in)
    lim2 = 1.0 / jnp.sqrt(ff_dim)
    return {
        "embedding": jax.random.normal(k_emb, (vocab, d_in), jnp.float32) * 0.02,
        "w1": jax.random.uniform(k_w1, (d_in, ff_dim), jnp.float32, -lim1, lim1),
        "b1": jax.random.uniform(k_b1, (ff_dim,), jnp.float32, -lim1, lim1),
        "w2": jax.random.uniform(k_w2, (ff_dim, num_classes), jnp.float32, -lim2, lim2),
        "b2": jax.random.uniform(k_b2, (num_classes,), jnp.float32, -lim2, lim2),
    }


def _pad_params(p, vocab, d_in, ff_dim, num_classes, *, seq_len):
    """Zero-pad every feature dim to a multiple of 128 lanes; weights -> bf16.

    Zero padding is numerically inert (padded emb columns / w1 rows / w2 rows
    contribute 0; padded logit lanes are sliced off).  The linear 1/seq_len
    mean-pool scale is folded into W1 so the kernel's pooled accumulator can
    stay a raw count-sum.
    """
    Vp, Dp = _round_up(vocab, LANE), _round_up(d_in, LANE)
    FFp, Cp = _round_up(ff_dim, LANE), _round_up(num_classes, LANE)
    emb = jnp.zeros((Vp, Dp), jnp.float32).at[:vocab, :d_in].set(p["embedding"])
    w1 = jnp.zeros((Dp, FFp), jnp.float32).at[:d_in, :ff_dim].set(
        p["w1"] * (1.0 / seq_len))
    b1 = jnp.zeros((1, FFp), jnp.float32).at[0, :ff_dim].set(p["b1"])
    w2 = jnp.zeros((FFp, Cp), jnp.float32).at[:ff_dim, :num_classes].set(p["w2"])
    b2 = jnp.zeros((1, Cp), jnp.float32).at[0, :num_classes].set(p["b2"])
    return {
        "emb": emb.astype(jnp.bfloat16),   # bf16 storage: half HBM bytes, native MXU
        "w1": w1.astype(jnp.bfloat16),
        "b1": b1,                          # biases stay f32 (added post-accumulate)
        "w2": w2.astype(jnp.bfloat16),
        "b2": b2,
    }


if __name__ == "__main__":
    # Small deterministic shapes.  VOCAB=200 -> Vp=256 with v_tile=128 gives a
    # 2-step vocab reduction, and B=32 shrinks the batch tile to 16 -> 2 batch
    # tiles, so both grid axes / the accumulator / the pl.when tail are exercised.
    B, S, VOCAB = 32, 16, 200
    D_IN, FF_DIM, NUM_CLASSES = 32, 64, 2

    key = jax.random.PRNGKey(0)
    k_params, k_ids = jax.random.split(key)
    raw = _init_params(k_params, VOCAB, D_IN, FF_DIM, NUM_CLASSES)
    padded = _pad_params(raw, VOCAB, D_IN, FF_DIM, NUM_CLASSES, seq_len=S)
    input_ids = jax.random.randint(k_ids, (B, S), 0, VOCAB, dtype=jnp.int32)

    out = model_with_classification_head(input_ids, padded,
                                         num_classes=NUM_CLASSES, v_tile=128)
    out = jax.block_until_ready(out)

    # Pure-JAX f32 reference with the original module semantics:
    #   mean-pool(emb[ids]) -> Linear -> (Dropout=id) -> ReLU -> Linear -> sigmoid.
    feats = jnp.mean(raw["embedding"][input_ids], axis=1)
    h = jnp.maximum(feats @ raw["w1"] + raw["b1"], 0.0)
    ref = h @ raw["w2"] + raw["b2"]
    if NUM_CLASSES == 2:
        ref = jax.nn.sigmoid(ref)

    assert out.shape == (B, NUM_CLASSES)
    err = jnp.max(jnp.abs(out - ref))
    assert jnp.allclose(out, ref, atol=2e-2, rtol=2e-2), (
        f"kernel mismatch vs reference: max abs err {err}")

    print("KERNEL_OK")
</pallas_src>

<mosaic_0001>
module attributes {stable_mosaic.version = 11 : i64} {
  func.func @_head_kernel(%arg0: i32, %arg1: i32, %arg2: memref<16x128xbf16, #tpu.memory_space<vmem>>, %arg3: memref<128x128xbf16, #tpu.memory_space<vmem>>, %arg4: memref<128x128xbf16, #tpu.memory_space<vmem>>, %arg5: memref<1x128xf32, #tpu.memory_space<vmem>>, %arg6: memref<128x128xbf16, #tpu.memory_space<vmem>>, %arg7: memref<1x128xf32, #tpu.memory_space<vmem>>, %arg8: memref<16x128xf32, #tpu.memory_space<vmem>>, %arg9: memref<16x128xf32, #tpu.memory_space<vmem>>) attributes {dimension_semantics = [#tpu.dimension_semantics<parallel>, #tpu.dimension_semantics<arbitrary>], iteration_bounds = array<i64: 2, 2>, scalar_prefetch = 0 : i64, scratch_operands = 1 : i64, tpu.core_type = #tpu.core_type<tc>, window_params = [{transform_indices = @transform_0, window_bounds = array<i64: 16, 128>}, {transform_indices = @transform_1, window_bounds = array<i64: 128, 128>}, {pipeline_mode = #tpu.pipeline_mode<synchronous>, transform_indices = @transform_2, window_bounds = array<i64: 128, 128>}, {pipeline_mode = #tpu.pipeline_mode<synchronous>, transform_indices = @transform_3, window_bounds = array<i64: 1, 128>}, {pipeline_mode = #tpu.pipeline_mode<synchronous>, transform_indices = @transform_4, window_bounds = array<i64: 128, 128>}, {pipeline_mode = #tpu.pipeline_mode<synchronous>, transform_indices = @transform_5, window_bounds = array<i64: 1, 128>}, {transform_indices = @transform_6, window_bounds = array<i64: 16, 128>}]} {
    %c0_i32 = arith.constant 0 : i32
    %0 = arith.cmpi eq, %arg1, %c0_i32 : i32
    %1 = arith.extui %0 : i1 to i32
    %c0_i32_0 = arith.constant 0 : i32
    %2 = arith.cmpi ne, %1, %c0_i32_0 : i32
    scf.if %2 {
      %cst_9 = arith.constant 0.000000e+00 : f32
      %12 = vector.broadcast %cst_9 : f32 to vector<16x128xf32>
      %c0_10 = arith.constant 0 : index
      %c0_11 = arith.constant 0 : index
      %13 = vector.load %arg9[%c0_10, %c0_11] : memref<16x128xf32, #tpu.memory_space<vmem>>, vector<16x128xf32>
      tpu.vector_store %arg9[%c0_10, %c0_11], %12 {strides = array<i32>} : memref<16x128xf32, #tpu.memory_space<vmem>>, vector<16x128xf32>,
    } else {
    }
    %c0 = arith.constant 0 : index
    %c0_1 = arith.constant 0 : index
    %3 = vector.load %arg9[%c0, %c0_1] : memref<16x128xf32, #tpu.memory_space<vmem>>, vector<16x128xf32>
    %c0_2 = arith.constant 0 : index
    %c0_3 = arith.constant 0 : index
    %4 = vector.load %arg2[%c0_2, %c0_3] : memref<16x128xbf16, #tpu.memory_space<vmem>>, vector<16x128xbf16>
    %c0_4 = arith.constant 0 : index
    %c0_5 = arith.constant 0 : index
    %5 = vector.load %arg3[%c0_4, %c0_5] : memref<128x128xbf16, #tpu.memory_space<vmem>>, vector<128x128xbf16>
    %cst = arith.constant dense<0.000000e+00> : vector<16x128xf32>
    %6 = tpu.matmul %4, %5, %cst {dimension_numbers = #tpu.dot_dimension_numbers<[1], [0], [0], [1], [0, 0, 1, 1], [], []>} : vector<16x128xbf16>, vector<128x128xbf16>, vector<16x128xf32> -> vector<16x128xf32>
    %7 = arith.addf %3, %6 : vector<16x128xf32>
    %c0_6 = arith.constant 0 : index
    %c0_7 = arith.constant 0 : index
    %8 = vector.load %arg9[%c0_6, %c0_7] : memref<16x128xf32, #tpu.memory_space<vmem>>, vector<16x128xf32>
    tpu.vector_store %arg9[%c0_6, %c0_7], %7 {strides = array<i32>} : memref<16x128xf32, #tpu.memory_space<vmem>>, vector<16x128xf32>,
    %c1_i32 = arith.constant 1 : i32
    %9 = arith.cmpi eq, %arg1, %c1_i32 : i32
    %10 = arith.extui %9 : i1 to i32
    %c0_i32_8 = arith.constant 0 : i32
    %11 = arith.cmpi ne, %10, %c0_i32_8 : i32
    scf.if %11 {
      %c0_9 = arith.constant 0 : index
      %c0_10 = arith.constant 0 : index
      %12 = vector.load %arg9[%c0_9, %c0_10] : memref<16x128xf32, #tpu.memory_space<vmem>>, vector<16x128xf32>
      %13 = arith.truncf %12 : vector<16x128xf32> to vector<16x128xbf16>
      %c0_11 = arith.constant 0 : index
      %c0_12 = arith.constant 0 : index
      %14 = vector.load %arg4[%c0_11, %c0_12] : memref<128x128xbf16, #tpu.memory_space<vmem>>, vector<128x128xbf16>
      %cst_13 = arith.constant dense<0.000000e+00> : vector<16x128xf32>
      %15 = tpu.matmul %13, %14, %cst_13 {dimension_numbers = #tpu.dot_dimension_numbers<[1], [0], [0], [1], [0, 0, 1, 1], [], []>} : vector<16x128xbf16>, vector<128x128xbf16>, vector<16x128xf32> -> vector<16x128xf32>
      %c0_14 = arith.constant 0 : index
      %c0_15 = arith.constant 0 : index
      %16 = vector.load %arg5[%c0_14, %c0_15] : memref<1x128xf32, #tpu.memory_space<vmem>>, vector<1x128xf32>
      %17 = vector.broadcast %16 : vector<1x128xf32> to vector<16x128xf32>
      %18 = arith.addf %15, %17 : vector<16x128xf32>
      %cst_16 = arith.constant 0.000000e+00 : f32
      %19 = vector.broadcast %cst_16 : f32 to vector<16x128xf32>
      %20 = arith.maximumf %18, %19 : vector<16x128xf32>
      %21 = arith.truncf %20 : vector<16x128xf32> to vector<16x128xbf16>
      %c0_17 = arith.constant 0 : index
      %c0_18 = arith.constant 0 : index
      %22 = vector.load %arg6[%c0_17, %c0_18] : memref<128x128xbf16, #tpu.memory_space<vmem>>, vector<128x128xbf16>
      %cst_19 = arith.constant dense<0.000000e+00> : vector<16x128xf32>
      %23 = tpu.matmul %21, %22, %cst_19 {dimension_numbers = #tpu.dot_dimension_numbers<[1], [0], [0], [1], [0, 0, 1, 1], [], []>} : vector<16x128xbf16>, vector<128x128xbf16>, vector<16x128xf32> -> vector<16x128xf32>
      %c0_20 = arith.constant 0 : index
      %c0_21 = arith.constant 0 : index
      %24 = vector.load %arg7[%c0_20, %c0_21] : memref<1x128xf32, #tpu.memory_space<vmem>>, vector<1x128xf32>
      %25 = vector.broadcast %24 : vector<1x128xf32> to vector<16x128xf32>
      %26 = arith.addf %23, %25 : vector<16x128xf32>
      %27 = arith.negf %26 : vector<16x128xf32>
      %28 = math.exp %27 : vector<16x128xf32>
      %cst_22 = arith.constant 1.000000e+00 : f32
      %29 = vector.broadcast %cst_22 : f32 to vector<16x128xf32>
      %30 = arith.addf %29, %28 : vector<16x128xf32>
      %31 = arith.divf %29, %30 : vector<16x128xf32>
      %c0_23 = arith.constant 0 : index
      %c0_24 = arith.constant 0 : index
      %32 = vector.load %arg8[%c0_23, %c0_24] : memref<16x128xf32, #tpu.memory_space<vmem>>, vector<16x128xf32>
      tpu.vector_store %arg8[%c0_23, %c0_24], %31 {strides = array<i32>} : memref<16x128xf32, #tpu.memory_space<vmem>>, vector<16x128xf32>,
    } else {
    }
    return
  }
  func.func @transform_0(%arg0: i32, %arg1: i32) -> (i32, i32) {
    %c0_i32 = arith.constant 0 : i32
    return %arg0, %arg1 : i32, i32
  }
  func.func @transform_1(%arg0: i32, %arg1: i32) -> (i32, i32) {
    %c0_i32 = arith.constant 0 : i32
    %c0_i32_0 = arith.constant 0 : i32
    return %arg1, %c0_i32 : i32, i32
  }
  func.func @transform_2(%arg0: i32, %arg1: i32) -> (i32, i32) {
    %c0_i32 = arith.constant 0 : i32
    %c0_i32_0 = arith.constant 0 : i32
    %c0_i32_1 = arith.constant 0 : i32
    return %c0_i32, %c0_i32_0 : i32, i32
  }
  func.func @transform_3(%arg0: i32, %arg1: i32) -> (i32, i32) {
    %c0_i32 = arith.constant 0 : i32
    %c0_i32_0 = arith.constant 0 : i32
    %c0_i32_1 = arith.constant 0 : i32
    return %c0_i32, %c0_i32_0 : i32, i32
  }
  func.func @transform_4(%arg0: i32, %arg1: i32) -> (i32, i32) {
    %c0_i32 = arith.constant 0 : i32
    %c0_i32_0 = arith.constant 0 : i32
    %c0_i32_1 = arith.constant 0 : i32
    return %c0_i32, %c0_i32_0 : i32, i32
  }
  func.func @transform_5(%arg0: i32, %arg1: i32) -> (i32, i32) {
    %c0_i32 = arith.constant 0 : i32
    %c0_i32_0 = arith.constant 0 : i32
    %c0_i32_1 = arith.constant 0 : i32
    return %c0_i32, %c0_i32_0 : i32, i32
  }
  func.func @transform_6(%arg0: i32, %arg1: i32) -> (i32, i32) {
    %c0_i32 = arith.constant 0 : i32
    %c0_i32_0 = arith.constant 0 : i32
    return %arg0, %c0_i32 : i32, i32
  }
}

module attributes {stable_mosaic.version = 11 : i64} {
  func.func @_head_kernel(%arg0: i32, %arg1: i32, %arg2: memref<16x128xbf16, #tpu.memory_space<vmem>>, %arg3: memref<128x128xbf16, #tpu.memory_space<vmem>>, %arg4: memref<128x128xbf16, #tpu.memory_space<vmem>>, %arg5: memref<1x128xf32, #tpu.memory_space<vmem>>, %arg6: memref<128x128xbf16, #tpu.memory_space<vmem>>, %arg7: memref<1x128xf32, #tpu.memory_space<vmem>>, %arg8: memref<16x128xf32, #tpu.memory_space<vmem>>, %arg9: memref<16x128xf32, #tpu.memory_space<vmem>>) attributes {dimension_semantics = [#tpu.dimension_semantics<parallel>, #tpu.dimension_semantics<arbitrary>], iteration_bounds = array<i64: 2, 2>, scalar_prefetch = 0 : i64, scratch_operands = 1 : i64, tpu.core_type = #tpu.core_type<tc>, window_params = [{transform_indices = @transform_0, window_bounds = array<i64: 16, 128>}, {transform_indices = @transform_1, window_bounds = array<i64: 128, 128>}, {pipeline_mode = #tpu.pipeline_mode<synchronous>, transform_indices = @transform_2, window_bounds = array<i64: 128, 128>}, {pipeline_mode = #tpu.pipeline_mode<synchronous>, transform_indices = @transform_3, window_bounds = array<i64: 1, 128>}, {pipeline_mode = #tpu.pipeline_mode<synchronous>, transform_indices = @transform_4, window_bounds = array<i64: 128, 128>}, {pipeline_mode = #tpu.pipeline_mode<synchronous>, transform_indices = @transform_5, window_bounds = array<i64: 1, 128>}, {transform_indices = @transform_6, window_bounds = array<i64: 16, 128>}]} {
    %c0_i32 = arith.constant 0 : i32
    %0 = arith.cmpi eq, %arg1, %c0_i32 : i32
    %1 = arith.extui %0 : i1 to i32
    %c0_i32_0 = arith.constant 0 : i32
    %2 = arith.cmpi ne, %1, %c0_i32_0 : i32
    scf.if %2 {
      %cst_9 = arith.constant 0.000000e+00 : f32
      %12 = vector.broadcast %cst_9 : f32 to vector<16x128xf32>
      %c0_10 = arith.constant 0 : index
      %c0_11 = arith.constant 0 : index
      %13 = vector.load %arg9[%c0_10, %c0_11] : memref<16x128xf32, #tpu.memory_space<vmem>>, vector<16x128xf32>
      tpu.vector_store %arg9[%c0_10, %c0_11], %12 {strides = array<i32>} : memref<16x128xf32, #tpu.memory_space<vmem>>, vector<16x128xf32>,
    } else {
    }
    %c0 = arith.constant 0 : index
    %c0_1 = arith.constant 0 : index
    %3 = vector.load %arg9[%c0, %c0_1] : memref<16x128xf32, #tpu.memory_space<vmem>>, vector<16x128xf32>
    %c0_2 = arith.constant 0 : index
    %c0_3 = arith.constant 0 : index
    %4 = vector.load %arg2[%c0_2, %c0_3] : memref<16x128xbf16, #tpu.memory_space<vmem>>, vector<16x128xbf16>
    %c0_4 = arith.constant 0 : index
    %c0_5 = arith.constant 0 : index
    %5 = vector.load %arg3[%c0_4, %c0_5] : memref<128x128xbf16, #tpu.memory_space<vmem>>, vector<128x128xbf16>
    %cst = arith.constant dense<0.000000e+00> : vector<16x128xf32>
    %6 = tpu.matmul %4, %5, %cst {dimension_numbers = #tpu.dot_dimension_numbers<[1], [0], [0], [1], [0, 0, 1, 1], [], []>} : vector<16x128xbf16>, vector<128x128xbf16>, vector<16x128xf32> -> vector<16x128xf32>
    %7 = arith.addf %3, %6 : vector<16x128xf32>
    %c0_6 = arith.constant 0 : index
    %c0_7 = arith.constant 0 : index
    %8 = vector.load %arg9[%c0_6, %c0_7] : memref<16x128xf32, #tpu.memory_space<vmem>>, vector<16x128xf32>
    tpu.vector_store %arg9[%c0_6, %c0_7], %7 {strides = array<i32>} : memref<16x128xf32, #tpu.memory_space<vmem>>, vector<16x128xf32>,
    %c1_i32 = arith.constant 1 : i32
    %9 = arith.cmpi eq, %arg1, %c1_i32 : i32
    %10 = arith.extui %9 : i1 to i32
    %c0_i32_8 = arith.constant 0 : i32
    %11 = arith.cmpi ne, %10, %c0_i32_8 : i32
    scf.if %11 {
      %c0_9 = arith.constant 0 : index
      %c0_10 = arith.constant 0 : index
      %12 = vector.load %arg9[%c0_9, %c0_10] : memref<16x128xf32, #tpu.memory_space<vmem>>, vector<16x128xf32>
      %13 = arith.truncf %12 : vector<16x128xf32> to vector<16x128xbf16>
      %c0_11 = arith.constant 0 : index
      %c0_12 = arith.constant 0 : index
      %14 = vector.load %arg4[%c0_11, %c0_12] : memref<128x128xbf16, #tpu.memory_space<vmem>>, vector<128x128xbf16>
      %cst_13 = arith.constant dense<0.000000e+00> : vector<16x128xf32>
      %15 = tpu.matmul %13, %14, %cst_13 {dimension_numbers = #tpu.dot_dimension_numbers<[1], [0], [0], [1], [0, 0, 1, 1], [], []>} : vector<16x128xbf16>, vector<128x128xbf16>, vector<16x128xf32> -> vector<16x128xf32>
      %c0_14 = arith.constant 0 : index
      %c0_15 = arith.constant 0 : index
      %16 = vector.load %arg5[%c0_14, %c0_15] : memref<1x128xf32, #tpu.memory_space<vmem>>, vector<1x128xf32>
      %17 = vector.broadcast %16 : vector<1x128xf32> to vector<16x128xf32>
      %18 = arith.addf %15, %17 : vector<16x128xf32>
      %cst_16 = arith.constant 0.000000e+00 : f32
      %19 = vector.broadcast %cst_16 : f32 to vector<16x128xf32>
      %20 = arith.maximumf %18, %19 : vector<16x128xf32>
      %21 = arith.truncf %20 : vector<16x128xf32> to vector<16x128xbf16>
      %c0_17 = arith.constant 0 : index
      %c0_18 = arith.constant 0 : index
      %22 = vector.load %arg6[%c0_17, %c0_18] : memref<128x128xbf16, #tpu.memory_space<vmem>>, vector<128x128xbf16>
      %cst_19 = arith.constant dense<0.000000e+00> : vector<16x128xf32>
      %23 = tpu.matmul %21, %22, %cst_19 {dimension_numbers = #tpu.dot_dimension_numbers<[1], [0], [0], [1], [0, 0, 1, 1], [], []>} : vector<16x128xbf16>, vector<128x128xbf16>, vector<16x128xf32> -> vector<16x128xf32>
      %c0_20 = arith.constant 0 : index
      %c0_21 = arith.constant 0 : index
      %24 = vector.load %arg7[%c0_20, %c0_21] : memref<1x128xf32, #tpu.memory_space<vmem>>, vector<1x128xf32>
      %25 = vector.broadcast %24 : vector<1x128xf32> to vector<16x128xf32>
      %26 = arith.addf %23, %25 : vector<16x128xf32>
      %27 = arith.negf %26 : vector<16x128xf32>
      %28 = math.exp %27 : vector<16x128xf32>
      %cst_22 = arith.constant 1.000000e+00 : f32
      %29 = vector.broadcast %cst_22 : f32 to vector<16x128xf32>
      %30 = arith.addf %29, %28 : vector<16x128xf32>
      %31 = arith.divf %29, %30 : vector<16x128xf32>
      %c0_23 = arith.constant 0 : index
      %c0_24 = arith.constant 0 : index
      %32 = vector.load %arg8[%c0_23, %c0_24] : memref<16x128xf32, #tpu.memory_space<vmem>>, vector<16x128xf32>
      tpu.vector_store %arg8[%c0_23, %c0_24], %31 {strides = array<i32>} : memref<16x128xf32, #tpu.memory_space<vmem>>, vector<16x128xf32>,
    } else {
    }
    return
  }
  func.func @transform_0(%arg0: i32, %arg1: i32) -> (i32, i32) {
    %c0_i32 = arith.constant 0 : i32
    return %arg0, %arg1 : i32, i32
  }
  func.func @transform_1(%arg0: i32, %arg1: i32) -> (i32, i32) {
    %c0_i32 = arith.constant 0 : i32
    %c0_i32_0 = arith.constant 0 : i32
    return %arg1, %c0_i32 : i32, i32
  }
  func.func @transform_2(%arg0: i32, %arg1: i32) -> (i32, i32) {
    %c0_i32 = arith.constant 0 : i32
    %c0_i32_0 = arith.constant 0 : i32
    %c0_i32_1 = arith.constant 0 : i32
    return %c0_i32, %c0_i32_0 : i32, i32
  }
  func.func @transform_3(%arg0: i32, %arg1: i32) -> (i32, i32) {
    %c0_i32 = arith.constant 0 : i32
    %c0_i32_0 = arith.constant 0 : i32
    %c0_i32_1 = arith.constant 0 : i32
    return %c0_i32, %c0_i32_0 : i32, i32
  }
  func.func @transform_4(%arg0: i32, %arg1: i32) -> (i32, i32) {
    %c0_i32 = arith.constant 0 : i32
    %c0_i32_0 = arith.constant 0 : i32
    %c0_i32_1 = arith.constant 0 : i32
    return %c0_i32, %c0_i32_0 : i32, i32
  }
  func.func @transform_5(%arg0: i32, %arg1: i32) -> (i32, i32) {
    %c0_i32 = arith.constant 0 : i32
    %c0_i32_0 = arith.constant 0 : i32
    %c0_i32_1 = arith.constant 0 : i32
    return %c0_i32, %c0_i32_0 : i32, i32
  }
  func.func @transform_6(%arg0: i32, %arg1: i32) -> (i32, i32) {
    %c0_i32 = arith.constant 0 : i32
    %c0_i32_0 = arith.constant 0 : i32
    return %arg0, %c0_i32 : i32, i32
  }
}

</mosaic_0001>

<bundles_post_ra>
// kernel: tpu_custom_call.1
= control target key start
LH: loop header
LB: loop body
LE: loop exit
PB: predicated region body
PF: predicated region fallthrough
CT: control target
= control target key end

     0   :  { %s1985_s0 = inlined_call_operand.hbm [shape: bf16[32,256], index: 0, kind: input, shape index: {}]   ;;  %s1986_s1 = inlined_call_operand.hbm [shape: bf16[256,128], index: 1, kind: input, shape index: {}]   ;;  %s1987_s2 = inlined_call_operand.hbm [shape: bf16[128,128], index: 2, kind: input, shape index: {}]   ;;  %s1988_s3 = inlined_call_operand.vmem [shape: f32[1,128], index: 3, kind: input, shape index: {}]   ;;  %s1989_s4 = inlined_call_operand.hbm [shape: bf16[128,128], index: 4, kind: input, shape index: {}]   ;;  %s1990_s5 = inlined_call_operand.vmem [shape: f32[1,128], index: 5, kind: input, shape index: {}]   ;;  %s1991_s6 = inlined_call_operand.hbm [shape: f32[32,128], index: 6, kind: output, shape index: {}]  }
   0x1   :  { %2015 = sst [smem:[#allocation26_spill]] %s1987_s2 }
   0x2   :  { %2016 = sst [smem:[#allocation27_spill]] %s1988_s3 }
   0x3   :  { %2017 = sst [smem:[#allocation28_spill]] %s1989_s4 }
   0x4   :  { %2018 = sst [smem:[#allocation29_spill]] %s1990_s5 }
   0x5   :  { %2019 = sst [smem:[#allocation30_spill]] %s1991_s6 }
   0x6   :  { %11 = vsyncpa [#allocation4], 0 }
   0x7   :  { %13 = vsyncpa [#allocation4 + $0x1], 0 }
   0x8   :  { %14 = vsyncpa [#allocation7], 0 }
   0x9   :  { %16 = vsyncpa [#allocation7 + $0x1], 0 }
   0xa   :  { %17 = vsyncpa [#allocation10], 0 }
   0xb   :  { %18 = vsyncpa [#allocation5], 0 }
   0xc   :  { %20 = vsyncpa [#allocation5 + $0x1], 0  ;;  %s1540_s21 = smov 0   ;;  %s1542_s22 = smov 0  }
   0xd   :  { %s1544_s23 = smov 0   ;;  %s1546_s24 = smov 0  }
   0xe   :  { %s1548_s25 = smov 0   ;;  %s1550_s26 = smov 0  }
   0xf   :  { %s1552_s27 = smov 0   ;;  %s1554_s28 = smov 0  }
  0x10   :  { %s1556_s29 = smov 0   ;;  %s1558_s30 = smov 0  }
  0x11   :  { %s1560_s7 = smov 0   ;;  %s1562_s8 = smov 0  }
  0x12   :  { %s1564_s9 = smov 0   ;;  %s1566_s10 = smov 0  }
  0x13 LB: > { %2020 = sst [smem:[#allocation17_spill]] %s1436_s21  ;;  %s1607_s11 = sadd.s32 4294967295, %s1488_s10   ;;  %s1488_s10 = sphi %s1566_s10, %s26_s10   ;;  %s1484_s9 = sphi %s1564_s9, %s2085_s9   ;;  %s1480_s8 = sphi %s1562_s8, %s2084_s8   ;;  %s1476_s7 = sphi %s1560_s7, %s2083_s7   ;;  %s1472_s30 = sphi %s1558_s30, %s2082_s30   ;;  %s1468_s29 = sphi %s1556_s29, %s2081_s29   ;;  %s1464_s28 = sphi %s1554_s28, %s2080_s28   ;;  %s1460_s27 = sphi %s1552_s27, %s2079_s27   ;;  %s1456_s26 = sphi %s1550_s26, %s2078_s26   ;;  %s1452_s25 = sphi %s1548_s25, %s2077_s25   ;;  %s1448_s24 = sphi %s1546_s24, %s2076_s24   ;;  %s1444_s23 = sphi %s1544_s23, %s2075_s23   ;;  %s1440_s22 = sphi %s1542_s22, %s2074_s22   ;;  %s1436_s21 = sphi %s1540_s21, %s2073_s21  }
  0x14   : > { %2021 = sst [smem:[#allocation18_spill]] %s1440_s22  ;;  %s875_s12 = sadd.s32 4294967294, %s1488_s10  }
  0x15   : > { %2022 = sst [smem:[#allocation19_spill]] %s1472_s30  ;;  %p60_p0 = scmp.ne.s32.totalorder %s1464_s28, %s1460_s27 }
  0x16   : > { %2023 = sst [smem:[#allocation20_spill]] %s1476_s7  ;;  %p1997_p1 = scmp.eq.s32.totalorder %s1607_s11, 0 }
  0x17   : > { %2024 = sst [smem:[#allocation21_spill]] %s1607_s11  ;;  %p86_p2 = scmp.ne.s32.totalorder %s1452_s25, %s1448_s24 }
  0x18   : > { %p1616_p3 = por %p1997_p1, %p60_p0  ;;  %p193_p4 = scmp.ne.s32.totalorder %s1444_s23, %s1440_s22 }
  0x19   : > { %p1624_p5 = por %p86_p2, %p1997_p1  ;;  %p194_p6 = scmp.eq.s32.totalorder %s1607_s11, 3 }
  0x1a   : > { %s2025_s14 = scalar_select %p1616_p3, 1, 0 }
  0x1b   : > { %s2026_s15 = scalar_select %p1624_p5, 1, 0 }
  0x1c   : > { %p199_p7 = scmp.ne.s32.totalorder %s1440_s22, %s1436_s21  ;;  %p200_p8 = scmp.eq.s32.totalorder %s875_s12, 3 }
  0x1d   : > { %2027 = sst [smem:[#allocation22_spill]] %s2026_s15  ;;  %p1631_p9 = por %p194_p6, %p193_p4 }
  0x1e   : > { %p876_p10 = scmp.ge.s32.totalorder %s1488_s10, 1  ;;  %p1636_p11 = por %p200_p8, %p199_p7 }
  0x1f   : > { %s2028_s16 = scalar_select %p1631_p9, 1, 0 }
  0x20   : > { %s2030_s17 = scalar_select %p1636_p11, 1, 0 }
  0x21   : > { %2029 = sst [smem:[#allocation23_spill]] %s2028_s16  ;;  %p207_p12 = scmp.lt.s32.totalorder %s1488_s10, 5 }
  0x22   : > { %2031 = sst [smem:[#allocation24_spill]] %s2030_s17  ;;  %s1490_s19 = smov [#allocation8]  }
  0x23   : > { %p1641_p13 = pnand %p876_p10, %p207_p12  ;;  %s219_s20 = sshll.u32 %s1490_s19, 4  ;;  %s220_s20 = int_to_ptr.vmem [resolvable:$true] %s219_s20 }
  0x24   : > { %s1491_s27 = smov [#allocation9]   ;;  %s2034_s2 = sld [smem:[#allocation26_spill]] }
  0x25   : > { %s2032_s18 = scalar_select %p1641_p13, 1, 0 }
  0x26   : > { %p1033_p0 = pneg %p1641_p13  ;;  %s235_s12 = sshll.u32 %s1491_s27, 4  ;;  %s1653_s12 = int_to_ptr.vmem [resolvable:$true] %s235_s12 }
  0x28   : > { %p1649_p2 = pnand %p1033_p0, %p1997_p1 }
  0x2a   : > { %s1214_s21 = scalar_lea.hbm %s2034_s2, 1024  ;;  %p1216_p6 = pneg %p1649_p2 }
  0x2b   : > { %p1215_p4 = scmp.ne.s32.totalorder %s2034_s2, %s1214_s21  ;;  %p1221_p10 = scmp.lt.u32.totalorder %s1214_s21, %s2034_s2 }
  0x2d   : > { %p1217_p7 = pnand %p1216_p6, %p1215_p4 }
  0x2f   : > { %p1218_p8 = pneg %p1217_p7 }
  0x31   : > { %p1223_p12 = pnand %p1221_p10, %p1218_p8 }
  0x33   : > { %1226 = shalt.err (!%p1223_p12)
}
  0x34   : > { %s1227_s27 = scalar_lea.vmem %s220_s20, 1024  ;;  %p1235_p9 = scmp.lt.s32.totalorder %s220_s20, %s220_s20 }
  0x35   : > { %p1228_p0 = scmp.ne.s32.totalorder %s220_s20, %s1227_s27  ;;  %p1236_p5 = scmp.lt.s32.totalorder %s1227_s27, %s1227_s27 }
  0x37   : > { %p1230_p1 = pnand %p1228_p0, %p1216_p6  ;;  %p1237_p3 = por %p1236_p5, %p1235_p9 }
  0x39   : > { %p1231_p11 = pneg %p1230_p1 }
  0x3b   : > { %p1238_p13 = pnand %p1237_p3, %p1231_p11 }
  0x3d   : > { %1241 = shalt.err (!%p1238_p13)
}
  0x3e   : > { %s2002_s6 = smov 64   ;;  %s2004_s13 = smov 4  }
  0x3f   : > { %1036 = dma.hbm_to_vmem [thread:$0]  (!%p1649_p2), %s2034_s2, 1024, %s220_s20, [#allocation7], %s2002_s6, %s2002_s6, %s2004_s13  }
  0x40   : > { %s2035_s4 = sld [smem:[#allocation28_spill]] }
  0x46   : > { %s1242_s19 = scalar_lea.hbm %s2035_s4, 1024 }
  0x47   : > { %p1243_p1 = scmp.ne.s32.totalorder %s2035_s4, %s1242_s19  ;;  %p1249_p9 = scmp.lt.u32.totalorder %s1242_s19, %s2035_s4 }
  0x49   : > { %p1245_p3 = pnand %p1243_p1, %p1216_p6 }
  0x4b   : > { %p1246_p5 = pneg %p1245_p3 }
  0x4d   : > { %p1251_p11 = pnand %p1249_p9, %p1246_p5 }
  0x4f   : > { %1254 = shalt.err (!%p1251_p11)
}
  0x50   : > { %s1255_s20 = scalar_lea.vmem %s1653_s12, 1024  ;;  %p1263_p8 = scmp.lt.s32.totalorder %s1653_s12, %s1653_s12 }
  0x51   : > { %p1256_p13 = scmp.ne.s32.totalorder %s1653_s12, %s1255_s20  ;;  %p1264_p10 = scmp.lt.s32.totalorder %s1255_s20, %s1255_s20 }
  0x53   : > { %p1258_p4 = pnand %p1256_p13, %p1216_p6  ;;  %p1265_p12 = por %p1264_p10, %p1263_p8 }
  0x55   : > { %p1259_p7 = pneg %p1258_p4 }
  0x57   : > { %p1266_p0 = pnand %p1265_p12, %p1259_p7 }
  0x59   : > { %1269 = shalt.err (!%p1266_p0)
}
  0x5a   : > { %1039 = dma.hbm_to_vmem [thread:$0]  (!%p1649_p2), %s2035_s4, 1024, %s1653_s12, [#allocation10], %s2002_s6, %s2002_s6, %s2004_s13  }
  0x5b   : > { %s35_s30 = sadd.s32 1, %s1480_s8  ;;  %s38_s24 = sadd.s32 1, %s1484_s9 }
  0x5c   : > { %p36_p6 = scmp.ge.s32.totalorder %s35_s30, 2  ;;  %s47_s21 = sadd.s32 1, %s1468_s29 }
  0x5d   : > { %p54_p1 = scmp.ne.s32.totalorder %s1468_s29, %s1464_s28  ;;  %p2014_p3 = scmp.eq.s32.totalorder %s1488_s10, 0 }
  0x5e   : > { %s2087_s30 = smov (%p36_p6, %s35_s30), 0  ;;  %s2089_s24 = smov (!%p36_p6, %s38_s24), %s1484_s9 }
  0x5f   : > { %2036 = sst [smem:[#allocation25_spill]] %s2087_s30  ;;  %s1719_s7 = ssub.s32 %s1480_s8, %s2087_s30 }
  0x60   : > { %p1723_p2 = por %p2014_p3, %p54_p1  ;;  %p40_p5 = scmp.ge.s32.totalorder %s2089_s24, 2 }
  0x61   : > { %p71_p9 = scmp.eq.s32.totalorder %s1719_s7, 0  ;;  %p2013_p11 = scmp.lt.s32.totalorder %s1488_s10, 4 }
  0x62   : > { %s252_s16 = sand.u32 1, %s1468_s29   ;;  %s2091_s24 = smov (%p40_p5, %s2089_s24), 0 }
  0x63   : > { %s880_s17 = sshll.u32 %s252_s16, 3  ;;  %s42_s19 = ssub.s32 %s1484_s9, %s2091_s24 }
  0x64   : > { %s44_s27 = sor.u32 %s1719_s7, %s42_s19  ;;  %p181_p13 = scmp.eq.s32.totalorder %s42_s19, 0 }
  0x65   : > { %p45_p4 = scmp.eq.s32.totalorder %s44_s27, 0  ;;  %s929_s20 = sshll.u32 %s1484_s9, 2 }
  0x66   : > { %s2038_s3 = sadd.s32 1, %s1444_s23  ;;  %s262_s13 = sadd.s32 %s1480_s8, %s929_s20 }
  0x67   : > { %s1739_s5 = scalar_select %p181_p13, %s1444_s23, %s2038_s3  }
  0x68   : > { %s1742_s6 = scalar_select %p45_p4, %s1468_s29, %s47_s21  }
  0x69   : > { %s256_s2 = scalar_lea.vmem [#allocation3], %s880_s17  ;;  %s883_s30 = sshll.u32 %s262_s13, 6 }
  0x6a   : > { %s265_s4 = sshll.u32 %s256_s2, 4  ;;  %s1750_s11 = scalar_lea.hbm %s1985_s0, %s883_s30  ;;  %s1745_s4 = int_to_ptr.vmem [resolvable:$true] %s265_s4 }
  0x6b   : > { %p1756_p7 = pnand %p2013_p11, %p1723_p2  ;;  %s1760_s2 = scalar_lea.sflag [#allocation4], %s252_s16 }
  0x6c   : > { %s1270_s13 = scalar_lea.hbm %s1750_s11, 128  ;;  %s1275_s30 = scalar_lea.hbm %s1985_s0, 512 }
  0x6d   : > { %p1271_p8 = scmp.ne.s32.totalorder %s1750_s11, %s1270_s13  ;;  %p1272_p10 = pneg %p1756_p7 }
  0x6e   : > { %p1276_p6 = scmp.lt.u32.totalorder %s1750_s11, %s1985_s0  ;;  %p1277_p1 = scmp.lt.u32.totalorder %s1275_s30, %s1270_s13 }
  0x6f   : > { %p1273_p12 = pnand %p1272_p10, %p1271_p8  ;;  %p1279_p5 = scmp.lt.u32.totalorder %s1270_s13, %s1750_s11 }
  0x70   : > { %p1278_p2 = por %p1277_p1, %p1276_p6 }
  0x71   : > { %p1274_p0 = pneg %p1273_p12 }
  0x72   : > { %p1280_p13 = por %p1279_p5, %p1278_p2 }
  0x74   : > { %p1281_p4 = pnand %p1280_p13, %p1274_p0 }
  0x76   : > { %1284 = shalt.err (!%p1281_p4)
}
  0x77   : > { %s1285_s16 = scalar_lea.vmem %s1745_s4, 128  ;;  %s1494_s19 = smov [#allocation3]  }
  0x78   : > { %p1286_p8 = scmp.ne.s32.totalorder %s1745_s4, %s1285_s16  ;;  %s1290_s27 = sshll.u32 %s1494_s19, 4  ;;  %s1291_s27 = int_to_ptr.vmem [resolvable:$false] %s1290_s27 }
  0x79   : > { %s1292_s20 = scalar_lea.vmem %s1291_s27, 256  ;;  %p1293_p3 = scmp.lt.s32.totalorder %s1745_s4, %s1291_s27 }
  0x7a   : > { %p1288_p12 = pnand %p1286_p8, %p1272_p10  ;;  %p1294_p6 = scmp.lt.s32.totalorder %s1292_s20, %s1285_s16 }
  0x7c   : > { %p1289_p11 = pneg %p1288_p12  ;;  %p1295_p1 = por %p1294_p6, %p1293_p3 }
  0x7e   : > { %p1296_p2 = pnand %p1295_p1, %p1289_p11 }
  0x80   : > { %1299 = shalt.err (!%p1296_p2)
}
  0x81   : > { %s1495_s3 = smov 128   ;;  %s2040_s13 = smov 4  }
  0x82   : > { %s2041_s22 = smov 64   ;;  %s73_s15 = sadd.s32 1, %s1456_s26 }
  0x83   : > { %1043 = dma.hbm_to_vmem [thread:$0]  (!%p1756_p7), %s1750_s11, 128, %s1745_s4, %s1760_s2, %s1495_s3, %s2041_s22, %s2040_s13  }
  0x84   : > { %p80_p3 = scmp.ne.s32.totalorder %s1456_s26, %s1452_s25  ;;  %p2042_p11 = scmp.eq.s32.totalorder %s1488_s10, 0 }
  0x85   : > { %s1796_s21 = scalar_select %p71_p9, %s1456_s26, %s73_s15  }
  0x86   : > { %p82_p10 = por %p80_p3, %p2042_p11  ;;  %s275_s30 = sand.u32 1, %s1488_s10  }
  0x87   : > { %s277_s12 = sand.u32 1, %s1456_s26   ;;  %s930_s16 = sshll.u32 %s1480_s8, 10 }
  0x88   : > { %s884_s17 = sshll.u32 %s277_s12, 6  ;;  %s1806_s20 = scalar_lea.hbm %s1986_s1, %s930_s16 }
  0x89   : > { %s279_s4 = scalar_lea.vmem [#allocation6], %s884_s17  ;;  %p2043_p7 = scmp.lt.s32.totalorder %s1488_s10, 4 }
  0x8a   : > { %s286_s11 = sshll.u32 %s279_s4, 4  ;;  %s1816_s2 = scalar_lea.sflag [#allocation7], %s275_s30  ;;  %s1814_s11 = int_to_ptr.vmem [resolvable:$true] %s286_s11 }
  0x8b   : > { %p1810_p9 = pnand %p2043_p7, %p82_p10  ;;  %s1300_s3 = scalar_lea.hbm %s1806_s20, 1024 }
  0x8c   : > { %p1301_p0 = scmp.ne.s32.totalorder %s1806_s20, %s1300_s3  ;;  %s1305_s17 = scalar_lea.hbm %s1986_s1, 2048 }
  0x8d   : > { %p1302_p5 = pneg %p1810_p9  ;;  %p1306_p8 = scmp.lt.u32.totalorder %s1806_s20, %s1986_s1 }
  0x8e   : > { %p1307_p12 = scmp.lt.u32.totalorder %s1305_s17, %s1300_s3  ;;  %p1309_p1 = scmp.lt.u32.totalorder %s1300_s3, %s1806_s20 }
  0x8f   : > { %p1303_p13 = pnand %p1302_p5, %p1301_p0 }
  0x90   : > { %p1308_p6 = por %p1307_p12, %p1306_p8 }
  0x91   : > { %p1304_p4 = pneg %p1303_p13 }
  0x92   : > { %p1310_p2 = por %p1309_p1, %p1308_p6 }
  0x94   : > { %p1311_p3 = pnand %p1310_p2, %p1304_p4 }
  0x96   : > { %1314 = shalt.err (!%p1311_p3)
}
  0x97   : > { %s1315_s30 = scalar_lea.vmem %s1814_s11, 1024  ;;  %s1496_s27 = smov [#allocation6]  }
  0x98   : > { %p1316_p11 = scmp.ne.s32.totalorder %s1814_s11, %s1315_s30  ;;  %s1320_s4 = sshll.u32 %s1496_s27, 4  ;;  %s1321_s4 = int_to_ptr.vmem [resolvable:$false] %s1320_s4 }
  0x99   : > { %s1322_s15 = scalar_lea.vmem %s1321_s4, 2048  ;;  %p1323_p0 = scmp.lt.s32.totalorder %s1814_s11, %s1321_s4 }
  0x9a   : > { %p1318_p10 = pnand %p1316_p11, %p1302_p5  ;;  %p1324_p13 = scmp.lt.s32.totalorder %s1322_s15, %s1315_s30 }
  0x9c   : > { %p1319_p7 = pneg %p1318_p10  ;;  %p1325_p8 = por %p1324_p13, %p1323_p0 }
  0x9e   : > { %p1326_p12 = pnand %p1325_p8, %p1319_p7 }
  0xa0   : > { %1329 = shalt.err (!%p1326_p12)
}
  0xa1   : > { %1046 = dma.hbm_to_vmem [thread:$0]  (!%p1810_p9), %s1806_s20, 1024, %s1814_s11, %s1816_s2, %s2041_s22, %s2041_s22, %s2040_s13  }
  0xa2   : > { %p2045_p5 = scmp.ne.s32.totalorder %s2032_s18, 0 }
  0xa3   : > { %s300_s3 = sand.u32 (!%p2045_p5), 1, %s1464_s28   ;;  %p2046_p4 = scmp.ne.s32.totalorder (!%p2045_p5), %s2025_s14, 0 }
  0xa4   : > { %298 = sbr.rel (%p2045_p5) target bundleno = 953 (0x3b9), region = 44  ;;  %s1850_s12 = sshll.u32 (!%p2045_p5), %s300_s3, 3 }
  0xa5   : > { %s301_s17 = scalar_lea.sflag (!%p2045_p5), [#allocation4], %s300_s3  ;;  %s304_s16 = scalar_lea.vmem (!%p2045_p5), [#allocation3], %s1850_s12 }
  0xab   : > { %1415 = dma.done.wait (%p2046_p4), %s301_s17, 128  }
  0xac   : > { %1417 = vsyncadd (%p2046_p4), %s301_s17, 4294967168  ;;  %s2047_s7 = sld [smem:[#allocation21_spill]]  ;;  %s2048_s19 = sld [smem:[#allocation22_spill]] }
  0xad   : > { %s311_s22 = sand.u32 1, %s1452_s25  }
  0xae   : > { %s889_s18 = sshll.u32 %s311_s22, 6 }
  0xaf   : > { %s1859_s11 = scalar_lea.vmem [#allocation6], %s889_s18 }
  0xb2   : > { %s309_s13 = sand.u32 1, %s2047_s7   ;;  %p2049_p9 = scmp.ne.s32.totalorder %s2048_s19, 0 }
  0xb3   : > { %s310_s20 = scalar_lea.sflag [#allocation7], %s309_s13 }
  0xb4   : > { %1419 = dma.done.wait (%p2049_p9), %s310_s20, 1024  }
  0xb5   : > { %1421 = vsyncadd (%p2049_p9), %s310_s20, 4294966272  ;;  %p2050_p6 = scmp.eq.s32.totalorder %s2047_s7, 0 }
  0xb7   : > { %1423 = dma.done.wait (%p2050_p6), [#allocation7], 1024   ;;  %p2051_p1 = pmov %p2050_p6 }
  0xb9   : > { %1425 = vsyncadd (%p2051_p1), [#allocation7], 4294966272  ;;  %p2052_p2 = pmov %p2051_p1 }
  0xba   : > { %p2053_p3 = pmov %p2051_p1 }
  0xbb   : > { %1427 = dma.done.wait (%p2052_p2), [#allocation10], 1024  }
  0xbc   : > { %1429 = vsyncadd (%p2053_p3), [#allocation10], 4294966272  ;;  %s2054_s14 = sld [smem:[#allocation18_spill]]  ;;  %s2055_s4 = sld [smem:[#allocation19_spill]] }
  0xc2   : > { %s352_s2 = sand.u32 1, %s2054_s14   ;;  %p893_p11 = scmp.ne.s32.totalorder %s2055_s4, 0 }
  0xc3   : > { %s892_s30 = sshll.u32 %s352_s2, 4  ;;  %v1497_v0 = vmov (!%p893_p11), 0.0  }
  0xc4   : > { %s1876_s27 = scalar_lea.vmem [#allocation11], %s892_s30  ;;  %362 = sbr.rel (%p893_p11) target bundleno = 203 (0xcb), region = 64  ;;  %363 = vst [vmem:[#allocation2] sm:$0xff] (!%p893_p11), %v1497_v0  ;;  %364 = vst [vmem:[#allocation2 + $0x8] sm:$0xff] (!%p893_p11), %v1497_v0 }
  0xcb PF: > { %v1181_v1 = vld [vmem:[%s1859_s11] sm:$0xff]   ;;  %v1498_v2 = vmov 0.0   ;;  %v1182_v3 = vld [vmem:[%s1859_s11 + $0x8] sm:$0xff]   ;;  %vm1499_vm0 = vmmov 0   ;;  %v1183_v4 = vld [vmem:[%s1859_s11 + $0x10] sm:$0xff]   ;;  %s2056_s15 = sld [smem:[#allocation19_spill]] }
  0xcc   : > { %959 = vmatprep.subr.bf16.mxu0 %v1498_v2  ;;  %975 = vmatprep.mubr.msk.bf16.mxu0 %vm1499_vm0, %v1498_v2  ;;  %v1184_v5 = vld [vmem:[%s1859_s11 + $0x18] sm:$0xff]   ;;  %v1185_v6 = vld [vmem:[%s1859_s11 + $0x20] sm:$0xff]   ;;  %v1186_v7 = vld [vmem:[%s1859_s11 + $0x28] sm:$0xff]  }
  0xcd   : > { %960 = vmatpush3.bf16.msra.mxu0 %v1181_v1  ;;  %v1187_v8 = vld [vmem:[%s1859_s11 + $0x30] sm:$0xff]   ;;  %v1188_v9 = vld [vmem:[%s1859_s11 + $0x38] sm:$0xff]   ;;  %v365_v11 = vld [vmem:[#allocation2] sm:$0xff] }
  0xce   : > { %961 = vmatprep.subr.bf16.mxu0 %v1498_v2  ;;  %v1189_v10 = vld [vmem:[%s304_s16] sm:$0xff]   ;;  %v366_v13 = vld [vmem:[#allocation2 + $0x8] sm:$0xff] }
  0xd1   : > { %962 = vmatpush3.bf16.msra.mxu0 %v1182_v3  ;;  %p903_p10 = scmp.ne.s32.totalorder %s2056_s15, 1 }
  0xd2   : > { %963 = vmatprep.subr.bf16.mxu0 %v1498_v2  ;;  %v1190_v19 = vld [vmem:[#allocation8] sm:$0xff] (!%p903_p10)   ;;  %v1500_v20 = vmov (!%p903_p10), 0.0   ;;  %v1191_v21 = vld [vmem:[#allocation8 + $0x8] sm:$0xff] (!%p903_p10)   ;;  %vm1501_vm1 = vmmov (!%p903_p10), 0   ;;  %v1192_v22 = vld [vmem:[#allocation8 + $0x10] sm:$0xff] (!%p903_p10)   ;;  %s2057_s17 = sld [smem:[#allocation27_spill]] (!%p903_p10) }
  0xd3   : > { %999 = vmatprep.subr.bf16.mxu1 (!%p903_p10), %v1500_v20  ;;  %1015 = vmatprep.mubr.msk.bf16.mxu1 (!%p903_p10), %vm1501_vm1, %v1500_v20  ;;  %v1198_v23 = vld [vmem:[#allocation9] sm:$0xff] (!%p903_p10)   ;;  %v1193_v24 = vld [vmem:[#allocation8 + $0x18] sm:$0xff] (!%p903_p10)   ;;  %v1199_v25 = vld [vmem:[#allocation9 + $0x8] sm:$0xff] (!%p903_p10)   ;;  %s2058_s19 = sld [smem:[#allocation29_spill]] (!%p903_p10) }
  0xd4   : > { %1000 = vmatpush3.bf16.msra.mxu1 (!%p903_p10), %v1198_v23  ;;  %v1194_v26 = vld [vmem:[#allocation8 + $0x20] sm:$0xff] (!%p903_p10)   ;;  %v1200_v27 = vld [vmem:[#allocation9 + $0x10] sm:$0xff] (!%p903_p10)   ;;  %v1195_v28 = vld [vmem:[#allocation8 + $0x28] sm:$0xff] (!%p903_p10)  }
  0xd5   : > { %964 = vmatpush3.bf16.msra.mxu0 %v1183_v4  ;;  %1001 = vmatprep.subr.bf16.mxu1 (!%p903_p10), %v1500_v20  ;;  %v1201_v29 = vld [vmem:[#allocation9 + $0x18] sm:$0xff] (!%p903_p10)   ;;  %v1196_v30 = vld [vmem:[#allocation8 + $0x30] sm:$0xff] (!%p903_p10)   ;;  %v1202_v31 = vld [vmem:[#allocation9 + $0x20] sm:$0xff] (!%p903_p10)  }
  0xd6   : > { %965 = vmatprep.subr.bf16.mxu0 %v1498_v2  ;;  %v1197_v32 = vld [vmem:[#allocation8 + $0x38] sm:$0xff] (!%p903_p10)   ;;  %v1203_v35 = vld [vmem:[#allocation9 + $0x28] sm:$0xff] (!%p903_p10)   ;;  %v1204_v37 = vld [vmem:[#allocation9 + $0x30] sm:$0xff] (!%p903_p10)  }
  0xd7   : > { %v1205_v38 = vld [vmem:[#allocation9 + $0x38] sm:$0xff] (!%p903_p10)  }
  0xd8   : > { %1002 = vmatpush3.bf16.msra.mxu1 (!%p903_p10), %v1199_v25  ;;  %v904_v39 = vld [vmem:[%s2057_s17] ss:$0 sm:$0xff] (!%p903_p10) }
  0xd9   : > { %966 = vmatpush3.bf16.msra.mxu0 %v1184_v5  ;;  %1003 = vmatprep.subr.bf16.mxu1 (!%p903_p10), %v1500_v20  ;;  %v913_v49 = vld [vmem:[%s2058_s19] ss:$0 sm:$0xff] (!%p903_p10) }
  0xda   : > { %967 = vmatprep.subr.bf16.mxu0 %v1498_v2 }
  0xdc   : > { %1004 = vmatpush3.bf16.msra.mxu1 (!%p903_p10), %v1200_v27 }
  0xdd   : > { %968 = vmatpush3.bf16.msra.mxu0 %v1185_v6  ;;  %1005 = vmatprep.subr.bf16.mxu1 (!%p903_p10), %v1500_v20 }
  0xde   : > { %969 = vmatprep.subr.bf16.mxu0 %v1498_v2 }
  0xe0   : > { %1006 = vmatpush3.bf16.msra.mxu1 (!%p903_p10), %v1201_v29 }
  0xe1   : > { %970 = vmatpush3.bf16.msra.mxu0 %v1186_v7  ;;  %1007 = vmatprep.subr.bf16.mxu1 (!%p903_p10), %v1500_v20 }
  0xe2   : > { %971 = vmatprep.subr.bf16.mxu0 %v1498_v2 }
  0xe4   : > { %1008 = vmatpush3.bf16.msra.mxu1 (!%p903_p10), %v1202_v31 }
  0xe5   : > { %972 = vmatpush3.bf16.msra.mxu0 %v1187_v8  ;;  %1009 = vmatprep.subr.bf16.mxu1 (!%p903_p10), %v1500_v20 }
  0xe6   : > { %973 = vmatprep.subr.bf16.mxu0 %v1498_v2 }
  0xe8   : > { %1010 = vmatpush3.bf16.msra.mxu1 (!%p903_p10), %v1203_v35 }
  0xe9   : > { %974 = vmatpush3.bf16.msra.mxu0 %v1188_v9  ;;  %1011 = vmatprep.subr.bf16.mxu1 (!%p903_p10), %v1500_v20 }
  0xea   : > { %979 = vmatprep.subr.bf16.mxu0 (!%p903_p10), %v1500_v20 }
  0xec   : > { %976 = vmatmul.mubr.bf16.vlgmr.msra.gmra.mrb[0].mxu0 %v1189_v10  ;;  %1012 = vmatpush3.bf16.msra.mxu1 (!%p903_p10), %v1204_v37 }
  0xed   : > { %980 = vmatpush3.bf16.msra.mxu0 (!%p903_p10), %v1190_v19  ;;  %995 = vmatprep.mubr.msk.bf16.mxu0 (!%p903_p10), %vm1501_vm1, %v1500_v20 }
  0xee   : > { %981 = vmatprep.subr.bf16.mxu0 (!%p903_p10), %v1500_v20  ;;  %1013 = vmatprep.subr.bf16.mxu1 (!%p903_p10), %v1500_v20 }
  0xf0   : > { %1014 = vmatpush3.bf16.msra.mxu1 (!%p903_p10), %v1205_v38 }
  0xf1   : > { %982 = vmatpush3.bf16.msra.mxu0 (!%p903_p10), %v1191_v21 }
  0xf2   : > { %983 = vmatprep.subr.bf16.mxu0 (!%p903_p10), %v1500_v20 }
  0xf5   : > { %984 = vmatpush3.bf16.msra.mxu0 (!%p903_p10), %v1192_v22 }
  0xf6   : > { %985 = vmatprep.subr.bf16.mxu0 (!%p903_p10), %v1500_v20 }
  0xf9   : > { %986 = vmatpush3.bf16.msra.mxu0 (!%p903_p10), %v1193_v24 }
  0xfa   : > { %987 = vmatprep.subr.bf16.mxu0 (!%p903_p10), %v1500_v20 }
  0xfd   : > { %988 = vmatpush3.bf16.msra.mxu0 (!%p903_p10), %v1194_v26 }
  0xfe   : > { %989 = vmatprep.subr.bf16.mxu0 (!%p903_p10), %v1500_v20 }
 0x101   : > { %990 = vmatpush3.bf16.msra.mxu0 (!%p903_p10), %v1195_v28 }
 0x102   : > { %991 = vmatprep.subr.bf16.mxu0 (!%p903_p10), %v1500_v20 }
 0x105   : > { %992 = vmatpush3.bf16.msra.mxu0 (!%p903_p10), %v1196_v30 }
 0x106   : > { %993 = vmatprep.subr.bf16.mxu0 (!%p903_p10), %v1500_v20 }
 0x109   : > { %994 = vmatpush3.bf16.msra.mxu0 (!%p903_p10), %v1197_v32 }
 0x1be   : > { %487 = sbr.rel (%p903_p10) target bundleno = 925 (0x39d), region = 68 }
 0x1bf   : > { %v473_v12 = vpop.f32.mrb[0].mxu0 }
 0x1c0   : > { %v480_v14 = vadd.f32 %v473_v12, %v365_v11  ;;  %v977_v15 = vpop.f32.mrb[1].mxu0 }
 0x1c1   : > { %v476_v16 = vpop.f32.mrb[2].mxu0 }
 0x1c2   : > { %482 = vst [vmem:[#allocation2] sm:$0xff] %v480_v14  ;;  %v481_v17 = vadd.f32 %v476_v16, %v366_v13  ;;  %v978_v18 = vpop.f32.mrb[3].mxu0 }
 0x1c4   : > { %483 = vst [vmem:[#allocation2 + $0x8] sm:$0xff] %v481_v17 }
 0x1c9   : > { %v488_v33 = vld [vmem:[#allocation2] sm:$0xff] }
 0x1cb   : > { %v489_v34 = vld [vmem:[#allocation2 + $0x8] sm:$0xff] }
 0x1cc   : > { %v490_v36 = vpack.c.bf16 %v489_v34, %v488_v33 }
 0x1ce   : > { %996 = vmatmul.mubr.bf16.vlgmr.msra.gmra.mrb[0].mxu0 %v490_v36 }
 0x2a1   : > { %v596_v40 = vpop.f32.mrb[0].mxu0 }
 0x2a2   : > { %v597_v41 = vadd.f32 %v904_v39, %v596_v40  ;;  %v997_v42 = vpop.f32.mrb[1].mxu0 }
 0x2a3   : > { %v599_v43 = vpop.f32.mrb[2].mxu0 }
 0x2a4   : > { %v600_v44 = vadd.f32 %v904_v39, %v599_v43  ;;  %v998_v45 = vpop.f32.mrb[3].mxu0  ;;  %v603_v46 = vmax.f32 %v597_v41, 0.0 }
 0x2a6   : > { %v604_v47 = vmax.f32 %v600_v44, 0.0 }
 0x2a8   : > { %v605_v48 = vpack.c.bf16 %v604_v47, %v603_v46 }
 0x2aa   : > { %1016 = vmatmul.mubr.bf16.vlgmr.msra.gmra.mrb[0].mxu1 %v605_v48 }
 0x37d   : > { %v711_v50 = vpop.f32.mrb[0].mxu1 }
 0x37e   : > { %v712_v51 = vadd.f32 %v913_v49, %v711_v50  ;;  %v1017_v52 = vpop.f32.mrb[1].mxu1 }
 0x37f   : > { %v714_v53 = vpop.f32.mrb[2].mxu1 }
 0x380   : > { %v922_v54 = vmul.f32 -1.442695, %v712_v51  ;;  %v715_v55 = vadd.f32 %v913_v49, %v714_v53  ;;  %v1018_v56 = vpop.f32.mrb[3].mxu1 }
 0x382   : > { %1206 = vpow2.f32 %v922_v54  ;;  %v923_v57 = vmul.f32 -1.442695, %v715_v55 }
 0x384   : > { %1208 = vpow2.f32 %v923_v57 }
 0x38c   : > { %v1207_v58 = vpop.eup %1206 }
 0x38d   : > { %v724_v59 = vadd.f32 1.0, %v1207_v58 }
 0x38e   : > { %v1209_v60 = vpop.eup %1208 }
 0x38f   : > { %1210 = vrcp.f32 %v724_v59  ;;  %v725_v61 = vadd.f32 1.0, %v1209_v60 }
 0x391   : > { %1212 = vrcp.f32 %v725_v61 }
 0x399   : > { %v1211_v62 = vpop.eup %1210 }
 0x39a   : > { %730 = vst [vmem:[%s1876_s27] sm:$0xff] %v1211_v62 }
 0x39b   : > { %v1213_v63 = vpop.eup %1212 }
 0x39c   : > { %731 = vst [vmem:[%s1876_s27 + $0x8] sm:$0xff] %v1213_v63 }
 0x39d PF: > { %s2059_s13 = sld [smem:[#allocation20_spill]]  ;;  %s2061_s18 = sld [smem:[#allocation23_spill]] }
 0x39e   : > { %s2062_s30 = sld [smem:[#allocation30_spill]]  ;;  %s746_s3 = sshll.u32 %s1876_s27, 4  ;;  %s1905_s3 = int_to_ptr.vmem [resolvable:$true] %s746_s3 }
 0x39f   : > { %s1909_s12 = scalar_lea.sflag [#allocation5], %s352_s2  ;;  %s1330_s17 = scalar_lea.vmem %s1905_s3, 256 }
 0x3a0   : > { %p1331_p7 = scmp.ne.s32.totalorder %s1905_s3, %s1330_s17  ;;  %s1502_s16 = smov [#allocation11]  }
 0x3a1   : > { %s1334_s7 = sshll.u32 %s1502_s16, 4  ;;  %s1335_s7 = int_to_ptr.vmem [resolvable:$false] %s1334_s7 }
 0x3a2   : > { %s1336_s19 = scalar_lea.vmem %s1335_s7, 512  ;;  %p1337_p12 = scmp.lt.s32.totalorder %s1905_s3, %s1335_s7 }
 0x3a3   : > { %s931_s20 = sshll.u32 %s2059_s13, 8  ;;  %p2064_p0 = scmp.ne.s32.totalorder %s2061_s18, 0 }
 0x3a4   : > { %s2063_s4 = smov %s2062_s30  ;;  %s1902_s15 = scalar_lea.hbm %s2062_s30, %s931_s20 }
 0x3a5   : > { %p1332_p13 = pnand %p1331_p7, %p2064_p0  ;;  %p1338_p5 = scmp.lt.s32.totalorder %s1336_s19, %s1330_s17 }
 0x3a7   : > { %p1333_p8 = pneg %p1332_p13  ;;  %p1339_p4 = por %p1338_p5, %p1337_p12 }
 0x3a9   : > { %p1340_p9 = pnand %p1339_p4, %p1333_p8 }
 0x3ab   : > { %1343 = shalt.err (!%p1340_p9)
}
 0x3ac   : > { %s1344_s2 = scalar_lea.hbm %s1902_s15, 256  ;;  %s1348_s22 = scalar_lea.hbm %s2063_s4, 512 }
 0x3ad   : > { %p1345_p6 = scmp.ne.s32.totalorder %s1902_s15, %s1344_s2  ;;  %p1349_p3 = scmp.lt.u32.totalorder %s1902_s15, %s2063_s4 }
 0x3ae   : > { %p1350_p11 = scmp.lt.u32.totalorder %s1348_s22, %s1344_s2  ;;  %p1352_p7 = scmp.lt.u32.totalorder %s1344_s2, %s1902_s15 }
 0x3af   : > { %p1346_p1 = pnand %p1345_p6, %p2064_p0 }
 0x3b0   : > { %p1351_p10 = por %p1350_p11, %p1349_p3 }
 0x3b1   : > { %p1347_p2 = pneg %p1346_p1 }
 0x3b2   : > { %p1353_p13 = por %p1352_p7, %p1351_p10 }
 0x3b4   : > { %p1354_p8 = pnand %p1353_p13, %p1347_p2 }
 0x3b6   : > { %1357 = shalt.err (!%p1354_p8)
}
 0x3b7   : > { %s1503_s14 = smov 128   ;;  %s1504_s30 = smov 8  }
 0x3b8   : > { %1031 = dma.vmem_to_hbm [thread:$0]  (%p2064_p0), %s1905_s3, 256, %s1902_s15, %s1909_s12, %s1503_s14, %s1503_s14, %s1504_s30  }
 0x3b9 PF: > { %s2065_s17 = sld [smem:[#allocation17_spill]]  ;;  %s2066_s16 = sld [smem:[#allocation24_spill]] }
 0x3ba   : > { %p1056_p12 = scmp.ge.s32.totalorder %s1488_s10, 2 }
 0x3bf   : > { %s761_s7 = sand.u32 1, %s2065_s17   ;;  %p2067_p5 = scmp.ne.s32.totalorder %s2066_s16, 0 }
 0x3c0   : > { %s762_s19 = scalar_lea.sflag [#allocation5], %s761_s7 }
 0x3c1   : > { %p1048_p4 = pnand %p1056_p12, %p2067_p5 }
 0x3c3   : > { %1431 = dma.done.wait (!%p1048_p4), %s762_s19, 256  }
 0x3c4   : > { %1433 = vsyncadd (!%p1048_p4), %s762_s19, 4294967040  ;;  %s26_s10 = sadd.s32 1, %s1488_s10   ;;  %s2069_s27 = sld [smem:[#allocation18_spill]] }
 0x3c5   : > { %p1938_p9 = scmp.ge.s32.totalorder %s26_s10, 6   ;;  %s2070_s18 = smov %s1796_s21 }
 0x3c6   : > { %s2071_s15 = sld [smem:[#allocation25_spill]]  ;;  %s2072_s3 = smov %s2091_s24 }
 0x3c7   : > { %s2074_s22 = smov %s1444_s23  ;;  %s2075_s23 = smov %s1739_s5 }
 0x3c8   : > { %s2076_s24 = smov %s1452_s25  ;;  %s2077_s25 = smov %s1456_s26 }
 0x3c9   : > { %s2078_s26 = smov %s2070_s18  ;;  %s2082_s30 = smov %s1480_s8 }
 0x3ca   : > { %s2073_s21 = smov %s2069_s27  ;;  %s2079_s27 = smov %s1464_s28 }
 0x3cb   : > { %s2080_s28 = smov %s1468_s29  ;;  %s2081_s29 = smov %s1742_s6 }
 0x3cc   : > { %s2083_s7 = smov %s1484_s9  ;;  %s2084_s8 = smov %s2071_s15 }
 0x3cd   : > { %s2085_s9 = smov %s2072_s3  ;;  %25 = sbr.rel (!%p1938_p9) target bundleno = 19 (0x13), region = 118 }
 0x3d4   :  { %767 = vsyncpa [#allocation4], 1 }
 0x3d5   :  { %769 = vsyncpa [#allocation4 + $0x1], 1 }
 0x3d6   :  { %770 = vsyncpa [#allocation7], 1 }
 0x3d7   :  { %772 = vsyncpa [#allocation7 + $0x1], 1 }
 0x3d8   :  { %773 = vsyncpa [#allocation10], 1 }
 0x3d9   :  { %774 = vsyncpa [#allocation5], 1 }
 0x3da   :  { %776 = vsyncpa [#allocation5 + $0x1], 1 }

// kernel: tpu_custom_call.1
= control target key start
LH: loop header
LB: loop body
LE: loop exit
PB: predicated region body
PF: predicated region fallthrough
CT: control target
= control target key end

     0   :  { %s1985_s0 = inlined_call_operand.hbm [shape: bf16[32,256], index: 0, kind: input, shape index: {}]   ;;  %s1986_s1 = inlined_call_operand.hbm [shape: bf16[256,128], index: 1, kind: input, shape index: {}]   ;;  %s1987_s2 = inlined_call_operand.hbm [shape: bf16[128,128], index: 2, kind: input, shape index: {}]   ;;  %s1988_s3 = inlined_call_operand.vmem [shape: f32[1,128], index: 3, kind: input, shape index: {}]   ;;  %s1989_s4 = inlined_call_operand.hbm [shape: bf16[128,128], index: 4, kind: input, shape index: {}]   ;;  %s1990_s5 = inlined_call_operand.vmem [shape: f32[1,128], index: 5, kind: input, shape index: {}]   ;;  %s1991_s6 = inlined_call_operand.hbm [shape: f32[32,128], index: 6, kind: output, shape index: {}]  }
   0x1   :  { %2015 = sst [smem:[#allocation26_spill]] %s1987_s2 }
   0x2   :  { %2016 = sst [smem:[#allocation27_spill]] %s1988_s3 }
   0x3   :  { %2017 = sst [smem:[#allocation28_spill]] %s1989_s4 }
   0x4   :  { %2018 = sst [smem:[#allocation29_spill]] %s1990_s5 }
   0x5   :  { %2019 = sst [smem:[#allocation30_spill]] %s1991_s6 }
   0x6   :  { %11 = vsyncpa [#allocation4], 0 }
   0x7   :  { %13 = vsyncpa [#allocation4 + $0x1], 0 }
   0x8   :  { %14 = vsyncpa [#allocation7], 0 }
   0x9   :  { %16 = vsyncpa [#allocation7 + $0x1], 0 }
   0xa   :  { %17 = vsyncpa [#allocation10], 0 }
   0xb   :  { %18 = vsyncpa [#allocation5], 0 }
   0xc   :  { %20 = vsyncpa [#allocation5 + $0x1], 0  ;;  %s1540_s21 = smov 0   ;;  %s1542_s22 = smov 0  }
   0xd   :  { %s1544_s23 = smov 0   ;;  %s1546_s24 = smov 0  }
   0xe   :  { %s1548_s25 = smov 0   ;;  %s1550_s26 = smov 0  }
   0xf   :  { %s1552_s27 = smov 0   ;;  %s1554_s28 = smov 0  }
  0x10   :  { %s1556_s29 = smov 0   ;;  %s1558_s30 = smov 0  }
  0x11   :  { %s1560_s7 = smov 0   ;;  %s1562_s8 = smov 0  }
  0x12   :  { %s1564_s9 = smov 0   ;;  %s1566_s10 = smov 0  }
  0x13 LB: > { %2020 = sst [smem:[#allocation17_spill]] %s1436_s21  ;;  %s1607_s11 = sadd.s32 4294967295, %s1488_s10   ;;  %s1488_s10 = sphi %s1566_s10, %s26_s10   ;;  %s1484_s9 = sphi %s1564_s9, %s2085_s9   ;;  %s1480_s8 = sphi %s1562_s8, %s2084_s8   ;;  %s1476_s7 = sphi %s1560_s7, %s2083_s7   ;;  %s1472_s30 = sphi %s1558_s30, %s2082_s30   ;;  %s1468_s29 = sphi %s1556_s29, %s2081_s29   ;;  %s1464_s28 = sphi %s1554_s28, %s2080_s28   ;;  %s1460_s27 = sphi %s1552_s27, %s2079_s27   ;;  %s1456_s26 = sphi %s1550_s26, %s2078_s26   ;;  %s1452_s25 = sphi %s1548_s25, %s2077_s25   ;;  %s1448_s24 = sphi %s1546_s24, %s2076_s24   ;;  %s1444_s23 = sphi %s1544_s23, %s2075_s23   ;;  %s1440_s22 = sphi %s1542_s22, %s2074_s22   ;;  %s1436_s21 = sphi %s1540_s21, %s2073_s21  }
  0x14   : > { %2021 = sst [smem:[#allocation18_spill]] %s1440_s22  ;;  %s875_s12 = sadd.s32 4294967294, %s1488_s10  }
  0x15   : > { %2022 = sst [smem:[#allocation19_spill]] %s1472_s30  ;;  %p60_p0 = scmp.ne.s32.totalorder %s1464_s28, %s1460_s27 }
  0x16   : > { %2023 = sst [smem:[#allocation20_spill]] %s1476_s7  ;;  %p1997_p1 = scmp.eq.s32.totalorder %s1607_s11, 0 }
  0x17   : > { %2024 = sst [smem:[#allocation21_spill]] %s1607_s11  ;;  %p86_p2 = scmp.ne.s32.totalorder %s1452_s25, %s1448_s24 }
  0x18   : > { %p1616_p3 = por %p1997_p1, %p60_p0  ;;  %p193_p4 = scmp.ne.s32.totalorder %s1444_s23, %s1440_s22 }
  0x19   : > { %p1624_p5 = por %p86_p2, %p1997_p1  ;;  %p194_p6 = scmp.eq.s32.totalorder %s1607_s11, 3 }
  0x1a   : > { %s2025_s14 = scalar_select %p1616_p3, 1, 0 }
  0x1b   : > { %s2026_s15 = scalar_select %p1624_p5, 1, 0 }
  0x1c   : > { %p199_p7 = scmp.ne.s32.totalorder %s1440_s22, %s1436_s21  ;;  %p200_p8 = scmp.eq.s32.totalorder %s875_s12, 3 }
  0x1d   : > { %2027 = sst [smem:[#allocation22_spill]] %s2026_s15  ;;  %p1631_p9 = por %p194_p6, %p193_p4 }
  0x1e   : > { %p876_p10 = scmp.ge.s32.totalorder %s1488_s10, 1  ;;  %p1636_p11 = por %p200_p8, %p199_p7 }
  0x1f   : > { %s2028_s16 = scalar_select %p1631_p9, 1, 0 }
  0x20   : > { %s2030_s17 = scalar_select %p1636_p11, 1, 0 }
  0x21   : > { %2029 = sst [smem:[#allocation23_spill]] %s2028_s16  ;;  %p207_p12 = scmp.lt.s32.totalorder %s1488_s10, 5 }
  0x22   : > { %2031 = sst [smem:[#allocation24_spill]] %s2030_s17  ;;  %s1490_s19 = smov [#allocation8]  }
  0x23   : > { %p1641_p13 = pnand %p876_p10, %p207_p12  ;;  %s219_s20 = sshll.u32 %s1490_s19, 4  ;;  %s220_s20 = int_to_ptr.vmem [resolvable:$true] %s219_s20 }
  0x24   : > { %s1491_s27 = smov [#allocation9]   ;;  %s2034_s2 = sld [smem:[#allocation26_spill]] }
  0x25   : > { %s2032_s18 = scalar_select %p1641_p13, 1, 0 }
  0x26   : > { %p1033_p0 = pneg %p1641_p13  ;;  %s235_s12 = sshll.u32 %s1491_s27, 4  ;;  %s1653_s12 = int_to_ptr.vmem [resolvable:$true] %s235_s12 }
  0x28   : > { %p1649_p2 = pnand %p1033_p0, %p1997_p1 }
  0x2a   : > { %s1214_s21 = scalar_lea.hbm %s2034_s2, 1024  ;;  %p1216_p6 = pneg %p1649_p2 }
  0x2b   : > { %p1215_p4 = scmp.ne.s32.totalorder %s2034_s2, %s1214_s21  ;;  %p1221_p10 = scmp.lt.u32.totalorder %s1214_s21, %s2034_s2 }
  0x2d   : > { %p1217_p7 = pnand %p1216_p6, %p1215_p4 }
  0x2f   : > { %p1218_p8 = pneg %p1217_p7 }
  0x31   : > { %p1223_p12 = pnand %p1221_p10, %p1218_p8 }
  0x33   : > { %1226 = shalt.err (!%p1223_p12)
}
  0x34   : > { %s1227_s27 = scalar_lea.vmem %s220_s20, 1024  ;;  %p1235_p9 = scmp.lt.s32.totalorder %s220_s20, %s220_s20 }
  0x35   : > { %p1228_p0 = scmp.ne.s32.totalorder %s220_s20, %s1227_s27  ;;  %p1236_p5 = scmp.lt.s32.totalorder %s1227_s27, %s1227_s27 }
  0x37   : > { %p1230_p1 = pnand %p1228_p0, %p1216_p6  ;;  %p1237_p3 = por %p1236_p5, %p1235_p9 }
  0x39   : > { %p1231_p11 = pneg %p1230_p1 }
  0x3b   : > { %p1238_p13 = pnand %p1237_p3, %p1231_p11 }
  0x3d   : > { %1241 = shalt.err (!%p1238_p13)
}
  0x3e   : > { %s2002_s6 = smov 64   ;;  %s2004_s13 = smov 4  }
  0x3f   : > { %1036 = dma.hbm_to_vmem [thread:$0]  (!%p1649_p2), %s2034_s2, 1024, %s220_s20, [#allocation7], %s2002_s6, %s2002_s6, %s2004_s13  }
  0x40   : > { %s2035_s4 = sld [smem:[#allocation28_spill]] }
  0x46   : > { %s1242_s19 = scalar_lea.hbm %s2035_s4, 1024 }
  0x47   : > { %p1243_p1 = scmp.ne.s32.totalorder %s2035_s4, %s1242_s19  ;;  %p1249_p9 = scmp.lt.u32.totalorder %s1242_s19, %s2035_s4 }
  0x49   : > { %p1245_p3 = pnand %p1243_p1, %p1216_p6 }
  0x4b   : > { %p1246_p5 = pneg %p1245_p3 }
  0x4d   : > { %p1251_p11 = pnand %p1249_p9, %p1246_p5 }
  0x4f   : > { %1254 = shalt.err (!%p1251_p11)
}
  0x50   : > { %s1255_s20 = scalar_lea.vmem %s1653_s12, 1024  ;;  %p1263_p8 = scmp.lt.s32.totalorder %s1653_s12, %s1653_s12 }
  0x51   : > { %p1256_p13 = scmp.ne.s32.totalorder %s1653_s12, %s1255_s20  ;;  %p1264_p10 = scmp.lt.s32.totalorder %s1255_s20, %s1255_s20 }
  0x53   : > { %p1258_p4 = pnand %p1256_p13, %p1216_p6  ;;  %p1265_p12 = por %p1264_p10, %p1263_p8 }
  0x55   : > { %p1259_p7 = pneg %p1258_p4 }
  0x57   : > { %p1266_p0 = pnand %p1265_p12, %p1259_p7 }
  0x59   : > { %1269 = shalt.err (!%p1266_p0)
}
  0x5a   : > { %1039 = dma.hbm_to_vmem [thread:$0]  (!%p1649_p2), %s2035_s4, 1024, %s1653_s12, [#allocation10], %s2002_s6, %s2002_s6, %s2004_s13  }
  0x5b   : > { %s35_s30 = sadd.s32 1, %s1480_s8  ;;  %s38_s24 = sadd.s32 1, %s1484_s9 }
  0x5c   : > { %p36_p6 = scmp.ge.s32.totalorder %s35_s30, 2  ;;  %s47_s21 = sadd.s32 1, %s1468_s29 }
  0x5d   : > { %p54_p1 = scmp.ne.s32.totalorder %s1468_s29, %s1464_s28  ;;  %p2014_p3 = scmp.eq.s32.totalorder %s1488_s10, 0 }
  0x5e   : > { %s2087_s30 = smov (%p36_p6, %s35_s30), 0  ;;  %s2089_s24 = smov (!%p36_p6, %s38_s24), %s1484_s9 }
  0x5f   : > { %2036 = sst [smem:[#allocation25_spill]] %s2087_s30  ;;  %s1719_s7 = ssub.s32 %s1480_s8, %s2087_s30 }
  0x60   : > { %p1723_p2 = por %p2014_p3, %p54_p1  ;;  %p40_p5 = scmp.ge.s32.totalorder %s2089_s24, 2 }
  0x61   : > { %p71_p9 = scmp.eq.s32.totalorder %s1719_s7, 0  ;;  %p2013_p11 = scmp.lt.s32.totalorder %s1488_s10, 4 }
  0x62   : > { %s252_s16 = sand.u32 1, %s1468_s29   ;;  %s2091_s24 = smov (%p40_p5, %s2089_s24), 0 }
  0x63   : > { %s880_s17 = sshll.u32 %s252_s16, 3  ;;  %s42_s19 = ssub.s32 %s1484_s9, %s2091_s24 }
  0x64   : > { %s44_s27 = sor.u32 %s1719_s7, %s42_s19  ;;  %p181_p13 = scmp.eq.s32.totalorder %s42_s19, 0 }
  0x65   : > { %p45_p4 = scmp.eq.s32.totalorder %s44_s27, 0  ;;  %s929_s20 = sshll.u32 %s1484_s9, 2 }
  0x66   : > { %s2038_s3 = sadd.s32 1, %s1444_s23  ;;  %s262_s13 = sadd.s32 %s1480_s8, %s929_s20 }
  0x67   : > { %s1739_s5 = scalar_select %p181_p13, %s1444_s23, %s2038_s3  }
  0x68   : > { %s1742_s6 = scalar_select %p45_p4, %s1468_s29, %s47_s21  }
  0x69   : > { %s256_s2 = scalar_lea.vmem [#allocation3], %s880_s17  ;;  %s883_s30 = sshll.u32 %s262_s13, 6 }
  0x6a   : > { %s265_s4 = sshll.u32 %s256_s2, 4  ;;  %s1750_s11 = scalar_lea.hbm %s1985_s0, %s883_s30  ;;  %s1745_s4 = int_to_ptr.vmem [resolvable:$true] %s265_s4 }
  0x6b   : > { %p1756_p7 = pnand %p2013_p11, %p1723_p2  ;;  %s1760_s2 = scalar_lea.sflag [#allocation4], %s252_s16 }
  0x6c   : > { %s1270_s13 = scalar_lea.hbm %s1750_s11, 128  ;;  %s1275_s30 = scalar_lea.hbm %s1985_s0, 512 }
  0x6d   : > { %p1271_p8 = scmp.ne.s32.totalorder %s1750_s11, %s1270_s13  ;;  %p1272_p10 = pneg %p1756_p7 }
  0x6e   : > { %p1276_p6 = scmp.lt.u32.totalorder %s1750_s11, %s1985_s0  ;;  %p1277_p1 = scmp.lt.u32.totalorder %s1275_s30, %s1270_s13 }
  0x6f   : > { %p1273_p12 = pnand %p1272_p10, %p1271_p8  ;;  %p1279_p5 = scmp.lt.u32.totalorder %s1270_s13, %s1750_s11 }
  0x70   : > { %p1278_p2 = por %p1277_p1, %p1276_p6 }
  0x71   : > { %p1274_p0 = pneg %p1273_p12 }
  0x72   : > { %p1280_p13 = por %p1279_p5, %p1278_p2 }
  0x74   : > { %p1281_p4 = pnand %p1280_p13, %p1274_p0 }
  0x76   : > { %1284 = shalt.err (!%p1281_p4)
}
  0x77   : > { %s1285_s16 = scalar_lea.vmem %s1745_s4, 128  ;;  %s1494_s19 = smov [#allocation3]  }
  0x78   : > { %p1286_p8 = scmp.ne.s32.totalorder %s1745_s4, %s1285_s16  ;;  %s1290_s27 = sshll.u32 %s1494_s19, 4  ;;  %s1291_s27 = int_to_ptr.vmem [resolvable:$false] %s1290_s27 }
  0x79   : > { %s1292_s20 = scalar_lea.vmem %s1291_s27, 256  ;;  %p1293_p3 = scmp.lt.s32.totalorder %s1745_s4, %s1291_s27 }
  0x7a   : > { %p1288_p12 = pnand %p1286_p8, %p1272_p10  ;;  %p1294_p6 = scmp.lt.s32.totalorder %s1292_s20, %s1285_s16 }
  0x7c   : > { %p1289_p11 = pneg %p1288_p12  ;;  %p1295_p1 = por %p1294_p6, %p1293_p3 }
  0x7e   : > { %p1296_p2 = pnand %p1295_p1, %p1289_p11 }
  0x80   : > { %1299 = shalt.err (!%p1296_p2)
}
  0x81   : > { %s1495_s3 = smov 128   ;;  %s2040_s13 = smov 4  }
  0x82   : > { %s2041_s22 = smov 64   ;;  %s73_s15 = sadd.s32 1, %s1456_s26 }
  0x83   : > { %1043 = dma.hbm_to_vmem [thread:$0]  (!%p1756_p7), %s1750_s11, 128, %s1745_s4, %s1760_s2, %s1495_s3, %s2041_s22, %s2040_s13  }
  0x84   : > { %p80_p3 = scmp.ne.s32.totalorder %s1456_s26, %s1452_s25  ;;  %p2042_p11 = scmp.eq.s32.totalorder %s1488_s10, 0 }
  0x85   : > { %s1796_s21 = scalar_select %p71_p9, %s1456_s26, %s73_s15  }
  0x86   : > { %p82_p10 = por %p80_p3, %p2042_p11  ;;  %s275_s30 = sand.u32 1, %s1488_s10  }
  0x87   : > { %s277_s12 = sand.u32 1, %s1456_s26   ;;  %s930_s16 = sshll.u32 %s1480_s8, 10 }
  0x88   : > { %s884_s17 = sshll.u32 %s277_s12, 6  ;;  %s1806_s20 = scalar_lea.hbm %s1986_s1, %s930_s16 }
  0x89   : > { %s279_s4 = scalar_lea.vmem [#allocation6], %s884_s17  ;;  %p2043_p7 = scmp.lt.s32.totalorder %s1488_s10, 4 }
  0x8a   : > { %s286_s11 = sshll.u32 %s279_s4, 4  ;;  %s1816_s2 = scalar_lea.sflag [#allocation7], %s275_s30  ;;  %s1814_s11 = int_to_ptr.vmem [resolvable:$true] %s286_s11 }
  0x8b   : > { %p1810_p9 = pnand %p2043_p7, %p82_p10  ;;  %s1300_s3 = scalar_lea.hbm %s1806_s20, 1024 }
  0x8c   : > { %p1301_p0 = scmp.ne.s32.totalorder %s1806_s20, %s1300_s3  ;;  %s1305_s17 = scalar_lea.hbm %s1986_s1, 2048 }
  0x8d   : > { %p1302_p5 = pneg %p1810_p9  ;;  %p1306_p8 = scmp.lt.u32.totalorder %s1806_s20, %s1986_s1 }
  0x8e   : > { %p1307_p12 = scmp.lt.u32.totalorder %s1305_s17, %s1300_s3  ;;  %p1309_p1 = scmp.lt.u32.totalorder %s1300_s3, %s1806_s20 }
  0x8f   : > { %p1303_p13 = pnand %p1302_p5, %p1301_p0 }
  0x90   : > { %p1308_p6 = por %p1307_p12, %p1306_p8 }
  0x91   : > { %p1304_p4 = pneg %p1303_p13 }
  0x92   : > { %p1310_p2 = por %p1309_p1, %p1308_p6 }
  0x94   : > { %p1311_p3 = pnand %p1310_p2, %p1304_p4 }
  0x96   : > { %1314 = shalt.err (!%p1311_p3)
}
  0x97   : > { %s1315_s30 = scalar_lea.vmem %s1814_s11, 1024  ;;  %s1496_s27 = smov [#allocation6]  }
  0x98   : > { %p1316_p11 = scmp.ne.s32.totalorder %s1814_s11, %s1315_s30  ;;  %s1320_s4 = sshll.u32 %s1496_s27, 4  ;;  %s1321_s4 = int_to_ptr.vmem [resolvable:$false] %s1320_s4 }
  0x99   : > { %s1322_s15 = scalar_lea.vmem %s1321_s4, 2048  ;;  %p1323_p0 = scmp.lt.s32.totalorder %s1814_s11, %s1321_s4 }
  0x9a   : > { %p1318_p10 = pnand %p1316_p11, %p1302_p5  ;;  %p1324_p13 = scmp.lt.s32.totalorder %s1322_s15, %s1315_s30 }
  0x9c   : > { %p1319_p7 = pneg %p1318_p10  ;;  %p1325_p8 = por %p1324_p13, %p1323_p0 }
  0x9e   : > { %p1326_p12 = pnand %p1325_p8, %p1319_p7 }
  0xa0   : > { %1329 = shalt.err (!%p1326_p12)
}
  0xa1   : > { %1046 = dma.hbm_to_vmem [thread:$0]  (!%p1810_p9), %s1806_s20, 1024, %s1814_s11, %s1816_s2, %s2041_s22, %s2041_s22, %s2040_s13  }
  0xa2   : > { %p2045_p5 = scmp.ne.s32.totalorder %s2032_s18, 0 }
  0xa3   : > { %s300_s3 = sand.u32 (!%p2045_p5), 1, %s1464_s28   ;;  %p2046_p4 = scmp.ne.s32.totalorder (!%p2045_p5), %s2025_s14, 0 }
  0xa4   : > { %298 = sbr.rel (%p2045_p5) target bundleno = 953 (0x3b9), region = 44  ;;  %s1850_s12 = sshll.u32 (!%p2045_p5), %s300_s3, 3 }
  0xa5   : > { %s301_s17 = scalar_lea.sflag (!%p2045_p5), [#allocation4], %s300_s3  ;;  %s304_s16 = scalar_lea.vmem (!%p2045_p5), [#allocation3], %s1850_s12 }
  0xab   : > { %1415 = dma.done.wait (%p2046_p4), %s301_s17, 128  }
  0xac   : > { %1417 = vsyncadd (%p2046_p4), %s301_s17, 4294967168  ;;  %s2047_s7 = sld [smem:[#allocation21_spill]]  ;;  %s2048_s19 = sld [smem:[#allocation22_spill]] }
  0xad   : > { %s311_s22 = sand.u32 1, %s1452_s25  }
  0xae   : > { %s889_s18 = sshll.u32 %s311_s22, 6 }
  0xaf   : > { %s1859_s11 = scalar_lea.vmem [#allocation6], %s889_s18 }
  0xb2   : > { %s309_s13 = sand.u32 1, %s2047_s7   ;;  %p2049_p9 = scmp.ne.s32.totalorder %s2048_s19, 0 }
  0xb3   : > { %s310_s20 = scalar_lea.sflag [#allocation7], %s309_s13 }
  0xb4   : > { %1419 = dma.done.wait (%p2049_p9), %s310_s20, 1024  }
  0xb5   : > { %1421 = vsyncadd (%p2049_p9), %s310_s20, 4294966272  ;;  %p2050_p6 = scmp.eq.s32.totalorder %s2047_s7, 0 }
  0xb7   : > { %1423 = dma.done.wait (%p2050_p6), [#allocation7], 1024   ;;  %p2051_p1 = pmov %p2050_p6 }
  0xb9   : > { %1425 = vsyncadd (%p2051_p1), [#allocation7], 4294966272  ;;  %p2052_p2 = pmov %p2051_p1 }
  0xba   : > { %p2053_p3 = pmov %p2051_p1 }
  0xbb   : > { %1427 = dma.done.wait (%p2052_p2), [#allocation10], 1024  }
  0xbc   : > { %1429 = vsyncadd (%p2053_p3), [#allocation10], 4294966272  ;;  %s2054_s14 = sld [smem:[#allocation18_spill]]  ;;  %s2055_s4 = sld [smem:[#allocation19_spill]] }
  0xc2   : > { %s352_s2 = sand.u32 1, %s2054_s14   ;;  %p893_p11 = scmp.ne.s32.totalorder %s2055_s4, 0 }
  0xc3   : > { %s892_s30 = sshll.u32 %s352_s2, 4  ;;  %v1497_v0 = vmov (!%p893_p11), 0.0  }
  0xc4   : > { %s1876_s27 = scalar_lea.vmem [#allocation11], %s892_s30  ;;  %362 = sbr.rel (%p893_p11) target bundleno = 203 (0xcb), region = 64  ;;  %363 = vst [vmem:[#allocation2] sm:$0xff] (!%p893_p11), %v1497_v0  ;;  %364 = vst [vmem:[#allocation2 + $0x8] sm:$0xff] (!%p893_p11), %v1497_v0 }
  0xcb PF: > { %v1181_v1 = vld [vmem:[%s1859_s11] sm:$0xff]   ;;  %v1498_v2 = vmov 0.0   ;;  %v1182_v3 = vld [vmem:[%s1859_s11 + $0x8] sm:$0xff]   ;;  %vm1499_vm0 = vmmov 0   ;;  %v1183_v4 = vld [vmem:[%s1859_s11 + $0x10] sm:$0xff]   ;;  %s2056_s15 = sld [smem:[#allocation19_spill]] }
  0xcc   : > { %959 = vmatprep.subr.bf16.mxu0 %v1498_v2  ;;  %975 = vmatprep.mubr.msk.bf16.mxu0 %vm1499_vm0, %v1498_v2  ;;  %v1184_v5 = vld [vmem:[%s1859_s11 + $0x18] sm:$0xff]   ;;  %v1185_v6 = vld [vmem:[%s1859_s11 + $0x20] sm:$0xff]   ;;  %v1186_v7 = vld [vmem:[%s1859_s11 + $0x28] sm:$0xff]  }
  0xcd   : > { %960 = vmatpush3.bf16.msra.mxu0 %v1181_v1  ;;  %v1187_v8 = vld [vmem:[%s1859_s11 + $0x30] sm:$0xff]   ;;  %v1188_v9 = vld [vmem:[%s1859_s11 + $0x38] sm:$0xff]   ;;  %v365_v11 = vld [vmem:[#allocation2] sm:$0xff] }
  0xce   : > { %961 = vmatprep.subr.bf16.mxu0 %v1498_v2  ;;  %v1189_v10 = vld [vmem:[%s304_s16] sm:$0xff]   ;;  %v366_v13 = vld [vmem:[#allocation2 + $0x8] sm:$0xff] }
  0xd1   : > { %962 = vmatpush3.bf16.msra.mxu0 %v1182_v3  ;;  %p903_p10 = scmp.ne.s32.totalorder %s2056_s15, 1 }
  0xd2   : > { %963 = vmatprep.subr.bf16.mxu0 %v1498_v2  ;;  %v1190_v19 = vld [vmem:[#allocation8] sm:$0xff] (!%p903_p10)   ;;  %v1500_v20 = vmov (!%p903_p10), 0.0   ;;  %v1191_v21 = vld [vmem:[#allocation8 + $0x8] sm:$0xff] (!%p903_p10)   ;;  %vm1501_vm1 = vmmov (!%p903_p10), 0   ;;  %v1192_v22 = vld [vmem:[#allocation8 + $0x10] sm:$0xff] (!%p903_p10)   ;;  %s2057_s17 = sld [smem:[#allocation27_spill]] (!%p903_p10) }
  0xd3   : > { %999 = vmatprep.subr.bf16.mxu1 (!%p903_p10), %v1500_v20  ;;  %1015 = vmatprep.mubr.msk.bf16.mxu1 (!%p903_p10), %vm1501_vm1, %v1500_v20  ;;  %v1198_v23 = vld [vmem:[#allocation9] sm:$0xff] (!%p903_p10)   ;;  %v1193_v24 = vld [vmem:[#allocation8 + $0x18] sm:$0xff] (!%p903_p10)   ;;  %v1199_v25 = vld [vmem:[#allocation9 + $0x8] sm:$0xff] (!%p903_p10)   ;;  %s2058_s19 = sld [smem:[#allocation29_spill]] (!%p903_p10) }
  0xd4   : > { %1000 = vmatpush3.bf16.msra.mxu1 (!%p903_p10), %v1198_v23  ;;  %v1194_v26 = vld [vmem:[#allocation8 + $0x20] sm:$0xff] (!%p903_p10)   ;;  %v1200_v27 = vld [vmem:[#allocation9 + $0x10] sm:$0xff] (!%p903_p10)   ;;  %v1195_v28 = vld [vmem:[#allocation8 + $0x28] sm:$0xff] (!%p903_p10)  }
  0xd5   : > { %964 = vmatpush3.bf16.msra.mxu0 %v1183_v4  ;;  %1001 = vmatprep.subr.bf16.mxu1 (!%p903_p10), %v1500_v20  ;;  %v1201_v29 = vld [vmem:[#allocation9 + $0x18] sm:$0xff] (!%p903_p10)   ;;  %v1196_v30 = vld [vmem:[#allocation8 + $0x30] sm:$0xff] (!%p903_p10)   ;;  %v1202_v31 = vld [vmem:[#allocation9 + $0x20] sm:$0xff] (!%p903_p10)  }
  0xd6   : > { %965 = vmatprep.subr.bf16.mxu0 %v1498_v2  ;;  %v1197_v32 = vld [vmem:[#allocation8 + $0x38] sm:$0xff] (!%p903_p10)   ;;  %v1203_v35 = vld [vmem:[#allocation9 + $0x28] sm:$0xff] (!%p903_p10)   ;;  %v1204_v37 = vld [vmem:[#allocation9 + $0x30] sm:$0xff] (!%p903_p10)  }
  0xd7   : > { %v1205_v38 = vld [vmem:[#allocation9 + $0x38] sm:$0xff] (!%p903_p10)  }
  0xd8   : > { %1002 = vmatpush3.bf16.msra.mxu1 (!%p903_p10), %v1199_v25  ;;  %v904_v39 = vld [vmem:[%s2057_s17] ss:$0 sm:$0xff] (!%p903_p10) }
  0xd9   : > { %966 = vmatpush3.bf16.msra.mxu0 %v1184_v5  ;;  %1003 = vmatprep.subr.bf16.mxu1 (!%p903_p10), %v1500_v20  ;;  %v913_v49 = vld [vmem:[%s2058_s19] ss:$0 sm:$0xff] (!%p903_p10) }
  0xda   : > { %967 = vmatprep.subr.bf16.mxu0 %v1498_v2 }
  0xdc   : > { %1004 = vmatpush3.bf16.msra.mxu1 (!%p903_p10), %v1200_v27 }
  0xdd   : > { %968 = vmatpush3.bf16.msra.mxu0 %v1185_v6  ;;  %1005 = vmatprep.subr.bf16.mxu1 (!%p903_p10), %v1500_v20 }
  0xde   : > { %969 = vmatprep.subr.bf16.mxu0 %v1498_v2 }
  0xe0   : > { %1006 = vmatpush3.bf16.msra.mxu1 (!%p903_p10), %v1201_v29 }
  0xe1   : > { %970 = vmatpush3.bf16.msra.mxu0 %v1186_v7  ;;  %1007 = vmatprep.subr.bf16.mxu1 (!%p903_p10), %v1500_v20 }
  0xe2   : > { %971 = vmatprep.subr.bf16.mxu0 %v1498_v2 }
  0xe4   : > { %1008 = vmatpush3.bf16.msra.mxu1 (!%p903_p10), %v1202_v31 }
  0xe5   : > { %972 = vmatpush3.bf16.msra.mxu0 %v1187_v8  ;;  %1009 = vmatprep.subr.bf16.mxu1 (!%p903_p10), %v1500_v20 }
  0xe6   : > { %973 = vmatprep.subr.bf16.mxu0 %v1498_v2 }
  0xe8   : > { %1010 = vmatpush3.bf16.msra.mxu1 (!%p903_p10), %v1203_v35 }
  0xe9   : > { %974 = vmatpush3.bf16.msra.mxu0 %v1188_v9  ;;  %1011 = vmatprep.subr.bf16.mxu1 (!%p903_p10), %v1500_v20 }
  0xea   : > { %979 = vmatprep.subr.bf16.mxu0 (!%p903_p10), %v1500_v20 }
  0xec   : > { %976 = vmatmul.mubr.bf16.vlgmr.msra.gmra.mrb[0].mxu0 %v1189_v10  ;;  %1012 = vmatpush3.bf16.msra.mxu1 (!%p903_p10), %v1204_v37 }
  0xed   : > { %980 = vmatpush3.bf16.msra.mxu0 (!%p903_p10), %v1190_v19  ;;  %995 = vmatprep.mubr.msk.bf16.mxu0 (!%p903_p10), %vm1501_vm1, %v1500_v20 }
  0xee   : > { %981 = vmatprep.subr.bf16.mxu0 (!%p903_p10), %v1500_v20  ;;  %1013 = vmatprep.subr.bf16.mxu1 (!%p903_p10), %v1500_v20 }
  0xf0   : > { %1014 = vmatpush3.bf16.msra.mxu1 (!%p903_p10), %v1205_v38 }
  0xf1   : > { %982 = vmatpush3.bf16.msra.mxu0 (!%p903_p10), %v1191_v21 }
  0xf2   : > { %983 = vmatprep.subr.bf16.mxu0 (!%p903_p10), %v1500_v20 }
  0xf5   : > { %984 = vmatpush3.bf16.msra.mxu0 (!%p903_p10), %v1192_v22 }
  0xf6   : > { %985 = vmatprep.subr.bf16.mxu0 (!%p903_p10), %v1500_v20 }
  0xf9   : > { %986 = vmatpush3.bf16.msra.mxu0 (!%p903_p10), %v1193_v24 }
  0xfa   : > { %987 = vmatprep.subr.bf16.mxu0 (!%p903_p10), %v1500_v20 }
  0xfd   : > { %988 = vmatpush3.bf16.msra.mxu0 (!%p903_p10), %v1194_v26 }
  0xfe   : > { %989 = vmatprep.subr.bf16.mxu0 (!%p903_p10), %v1500_v20 }
 0x101   : > { %990 = vmatpush3.bf16.msra.mxu0 (!%p903_p10), %v1195_v28 }
 0x102   : > { %991 = vmatprep.subr.bf16.mxu0 (!%p903_p10), %v1500_v20 }
 0x105   : > { %992 = vmatpush3.bf16.msra.mxu0 (!%p903_p10), %v1196_v30 }
 0x106   : > { %993 = vmatprep.subr.bf16.mxu0 (!%p903_p10), %v1500_v20 }
 0x109   : > { %994 = vmatpush3.bf16.msra.mxu0 (!%p903_p10), %v1197_v32 }
 0x1be   : > { %487 = sbr.rel (%p903_p10) target bundleno = 925 (0x39d), region = 68 }
 0x1bf   : > { %v473_v12 = vpop.f32.mrb[0].mxu0 }
 0x1c0   : > { %v480_v14 = vadd.f32 %v473_v12, %v365_v11  ;;  %v977_v15 = vpop.f32.mrb[1].mxu0 }
 0x1c1   : > { %v476_v16 = vpop.f32.mrb[2].mxu0 }
 0x1c2   : > { %482 = vst [vmem:[#allocation2] sm:$0xff] %v480_v14  ;;  %v481_v17 = vadd.f32 %v476_v16, %v366_v13  ;;  %v978_v18 = vpop.f32.mrb[3].mxu0 }
 0x1c4   : > { %483 = vst [vmem:[#allocation2 + $0x8] sm:$0xff] %v481_v17 }
 0x1c9   : > { %v488_v33 = vld [vmem:[#allocation2] sm:$0xff] }
 0x1cb   : > { %v489_v34 = vld [vmem:[#allocation2 + $0x8] sm:$0xff] }
 0x1cc   : > { %v490_v36 = vpack.c.bf16 %v489_v34, %v488_v33 }
 0x1ce   : > { %996 = vmatmul.mubr.bf16.vlgmr.msra.gmra.mrb[0].mxu0 %v490_v36 }
 0x2a1   : > { %v596_v40 = vpop.f32.mrb[0].mxu0 }
 0x2a2   : > { %v597_v41 = vadd.f32 %v904_v39, %v596_v40  ;;  %v997_v42 = vpop.f32.mrb[1].mxu0 }
 0x2a3   : > { %v599_v43 = vpop.f32.mrb[2].mxu0 }
 0x2a4   : > { %v600_v44 = vadd.f32 %v904_v39, %v599_v43  ;;  %v998_v45 = vpop.f32.mrb[3].mxu0  ;;  %v603_v46 = vmax.f32 %v597_v41, 0.0 }
 0x2a6   : > { %v604_v47 = vmax.f32 %v600_v44, 0.0 }
 0x2a8   : > { %v605_v48 = vpack.c.bf16 %v604_v47, %v603_v46 }
 0x2aa   : > { %1016 = vmatmul.mubr.bf16.vlgmr.msra.gmra.mrb[0].mxu1 %v605_v48 }
 0x37d   : > { %v711_v50 = vpop.f32.mrb[0].mxu1 }
 0x37e   : > { %v712_v51 = vadd.f32 %v913_v49, %v711_v50  ;;  %v1017_v52 = vpop.f32.mrb[1].mxu1 }
 0x37f   : > { %v714_v53 = vpop.f32.mrb[2].mxu1 }
 0x380   : > { %v922_v54 = vmul.f32 -1.442695, %v712_v51  ;;  %v715_v55 = vadd.f32 %v913_v49, %v714_v53  ;;  %v1018_v56 = vpop.f32.mrb[3].mxu1 }
 0x382   : > { %1206 = vpow2.f32 %v922_v54  ;;  %v923_v57 = vmul.f32 -1.442695, %v715_v55 }
 0x384   : > { %1208 = vpow2.f32 %v923_v57 }
 0x38c   : > { %v1207_v58 = vpop.eup %1206 }
 0x38d   : > { %v724_v59 = vadd.f32 1.0, %v1207_v58 }
 0x38e   : > { %v1209_v60 = vpop.eup %1208 }
 0x38f   : > { %1210 = vrcp.f32 %v724_v59  ;;  %v725_v61 = vadd.f32 1.0, %v1209_v60 }
 0x391   : > { %1212 = vrcp.f32 %v725_v61 }
 0x399   : > { %v1211_v62 = vpop.eup %1210 }
 0x39a   : > { %730 = vst [vmem:[%s1876_s27] sm:$0xff] %v1211_v62 }
 0x39b   : > { %v1213_v63 = vpop.eup %1212 }
 0x39c   : > { %731 = vst [vmem:[%s1876_s27 + $0x8] sm:$0xff] %v1213_v63 }
 0x39d PF: > { %s2059_s13 = sld [smem:[#allocation20_spill]]  ;;  %s2061_s18 = sld [smem:[#allocation23_spill]] }
 0x39e   : > { %s2062_s30 = sld [smem:[#allocation30_spill]]  ;;  %s746_s3 = sshll.u32 %s1876_s27, 4  ;;  %s1905_s3 = int_to_ptr.vmem [resolvable:$true] %s746_s3 }
 0x39f   : > { %s1909_s12 = scalar_lea.sflag [#allocation5], %s352_s2  ;;  %s1330_s17 = scalar_lea.vmem %s1905_s3, 256 }
 0x3a0   : > { %p1331_p7 = scmp.ne.s32.totalorder %s1905_s3, %s1330_s17  ;;  %s1502_s16 = smov [#allocation11]  }
 0x3a1   : > { %s1334_s7 = sshll.u32 %s1502_s16, 4  ;;  %s1335_s7 = int_to_ptr.vmem [resolvable:$false] %s1334_s7 }
 0x3a2   : > { %s1336_s19 = scalar_lea.vmem %s1335_s7, 512  ;;  %p1337_p12 = scmp.lt.s32.totalorder %s1905_s3, %s1335_s7 }
 0x3a3   : > { %s931_s20 = sshll.u32 %s2059_s13, 8  ;;  %p2064_p0 = scmp.ne.s32.totalorder %s2061_s18, 0 }
 0x3a4   : > { %s2063_s4 = smov %s2062_s30  ;;  %s1902_s15 = scalar_lea.hbm %s2062_s30, %s931_s20 }
 0x3a5   : > { %p1332_p13 = pnand %p1331_p7, %p2064_p0  ;;  %p1338_p5 = scmp.lt.s32.totalorder %s1336_s19, %s1330_s17 }
 0x3a7   : > { %p1333_p8 = pneg %p1332_p13  ;;  %p1339_p4 = por %p1338_p5, %p1337_p12 }
 0x3a9   : > { %p1340_p9 = pnand %p1339_p4, %p1333_p8 }
 0x3ab   : > { %1343 = shalt.err (!%p1340_p9)
}
 0x3ac   : > { %s1344_s2 = scalar_lea.hbm %s1902_s15, 256  ;;  %s1348_s22 = scalar_lea.hbm %s2063_s4, 512 }
 0x3ad   : > { %p1345_p6 = scmp.ne.s32.totalorder %s1902_s15, %s1344_s2  ;;  %p1349_p3 = scmp.lt.u32.totalorder %s1902_s15, %s2063_s4 }
 0x3ae   : > { %p1350_p11 = scmp.lt.u32.totalorder %s1348_s22, %s1344_s2  ;;  %p1352_p7 = scmp.lt.u32.totalorder %s1344_s2, %s1902_s15 }
 0x3af   : > { %p1346_p1 = pnand %p1345_p6, %p2064_p0 }
 0x3b0   : > { %p1351_p10 = por %p1350_p11, %p1349_p3 }
 0x3b1   : > { %p1347_p2 = pneg %p1346_p1 }
 0x3b2   : > { %p1353_p13 = por %p1352_p7, %p1351_p10 }
 0x3b4   : > { %p1354_p8 = pnand %p1353_p13, %p1347_p2 }
 0x3b6   : > { %1357 = shalt.err (!%p1354_p8)
}
 0x3b7   : > { %s1503_s14 = smov 128   ;;  %s1504_s30 = smov 8  }
 0x3b8   : > { %1031 = dma.vmem_to_hbm [thread:$0]  (%p2064_p0), %s1905_s3, 256, %s1902_s15, %s1909_s12, %s1503_s14, %s1503_s14, %s1504_s30  }
 0x3b9 PF: > { %s2065_s17 = sld [smem:[#allocation17_spill]]  ;;  %s2066_s16 = sld [smem:[#allocation24_spill]] }
 0x3ba   : > { %p1056_p12 = scmp.ge.s32.totalorder %s1488_s10, 2 }
 0x3bf   : > { %s761_s7 = sand.u32 1, %s2065_s17   ;;  %p2067_p5 = scmp.ne.s32.totalorder %s2066_s16, 0 }
 0x3c0   : > { %s762_s19 = scalar_lea.sflag [#allocation5], %s761_s7 }
 0x3c1   : > { %p1048_p4 = pnand %p1056_p12, %p2067_p5 }
 0x3c3   : > { %1431 = dma.done.wait (!%p1048_p4), %s762_s19, 256  }
 0x3c4   : > { %1433 = vsyncadd (!%p1048_p4), %s762_s19, 4294967040  ;;  %s26_s10 = sadd.s32 1, %s1488_s10   ;;  %s2069_s27 = sld [smem:[#allocation18_spill]] }
 0x3c5   : > { %p1938_p9 = scmp.ge.s32.totalorder %s26_s10, 6   ;;  %s2070_s18 = smov %s1796_s21 }
 0x3c6   : > { %s2071_s15 = sld [smem:[#allocation25_spill]]  ;;  %s2072_s3 = smov %s2091_s24 }
 0x3c7   : > { %s2074_s22 = smov %s1444_s23  ;;  %s2075_s23 = smov %s1739_s5 }
 0x3c8   : > { %s2076_s24 = smov %s1452_s25  ;;  %s2077_s25 = smov %s1456_s26 }
 0x3c9   : > { %s2078_s26 = smov %s2070_s18  ;;  %s2082_s30 = smov %s1480_s8 }
 0x3ca   : > { %s2073_s21 = smov %s2069_s27  ;;  %s2079_s27 = smov %s1464_s28 }
 0x3cb   : > { %s2080_s28 = smov %s1468_s29  ;;  %s2081_s29 = smov %s1742_s6 }
 0x3cc   : > { %s2083_s7 = smov %s1484_s9  ;;  %s2084_s8 = smov %s2071_s15 }
 0x3cd   : > { %s2085_s9 = smov %s2072_s3  ;;  %25 = sbr.rel (!%p1938_p9) target bundleno = 19 (0x13), region = 118 }
 0x3d4   :  { %767 = vsyncpa [#allocation4], 1 }
 0x3d5   :  { %769 = vsyncpa [#allocation4 + $0x1], 1 }
 0x3d6   :  { %770 = vsyncpa [#allocation7], 1 }
 0x3d7   :  { %772 = vsyncpa [#allocation7 + $0x1], 1 }
 0x3d8   :  { %773 = vsyncpa [#allocation10], 1 }
 0x3d9   :  { %774 = vsyncpa [#allocation5], 1 }
 0x3da   :  { %776 = vsyncpa [#allocation5 + $0x1], 1 }

</bundles_post_ra>
